<compile_context>
chip_gen: v5e
topology: v5e:2x2
jax: 0.10.0
libtpu: 0.0.40
codegen_flags: <defaults>
</compile_context>

<pallas_src>
import functools

import jax
import jax.numpy as jnp
from jax import lax
from jax.experimental import pallas as pl
from jax.experimental.pallas import tpu as pltpu


# NT matmul: contract the last dims of both operands (q @ k^T without a transpose).
_NT_DIMS = (((1,), (1,)), ((), ()))


# ----------------------------- in-kernel helpers -----------------------------

def _erf(x):
    # Abramowitz & Stegun 7.1.26 polynomial erf (|err| < 1.5e-7), built only from
    # ops with guaranteed Mosaic lowerings (exp, mul, add, abs, select, reciprocal).
    a1, a2, a3, a4, a5 = 0.254829592, -0.284496736, 1.421413741, -1.453152027, 1.061405429
    p = 0.3275911
    sgn = jnp.where(x >= 0.0, 1.0, -1.0)
    ax = jnp.abs(x)
    t = pl.reciprocal(1.0 + p * ax, approx=True)      # divide rides the EUP slot
    poly = ((((a5 * t + a4) * t + a3) * t + a2) * t + a1) * t
    return sgn * (1.0 - poly * jnp.exp(-ax * ax))


def _gelu_exact(x):
    # erf-based GELU, matching torch.nn.GELU() (approximate='none').
    return 0.5 * x * (1.0 + _erf(x * 0.7071067811865476))


def _layernorm(x, w, b, eps=1e-6):
    mu = jnp.mean(x, axis=-1, keepdims=True)
    var = jnp.mean(jnp.square(x - mu), axis=-1, keepdims=True)
    return (x - mu) * lax.rsqrt(var + eps) * w + b


# --------------------------------- the kernel --------------------------------

def transformer_block_kernel(x_ref, ln1w_ref, ln1b_ref,
                             wq_ref, bq_ref, wk_ref, bk_ref, wv_ref, bv_ref,
                             projw_ref, projb_ref, ln2w_ref, ln2b_ref,
                             fc1w_ref, fc1b_ref, fc2w_ref, fc2b_ref,
                             out_ref, *, heads):
    bb, N, C = x_ref.shape
    rows = bb * N
    dh = C // heads
    f32, bf16 = jnp.float32, jnp.bfloat16

    x = x_ref[...].reshape(rows, C)                     # (rows, C) f32

    # ---- attention branch: LN1 -> q/k/v (bf16 matmuls, f32 accumulate) ----
    xn = _layernorm(x, ln1w_ref[...], ln1b_ref[...])
    xnb = xn.astype(bf16)
    # dh**-0.5 already folded into wq/bq on the host.
    q = (jnp.dot(xnb, wq_ref[...], preferred_element_type=f32) + bq_ref[...]).astype(bf16)
    k = (jnp.dot(xnb, wk_ref[...], preferred_element_type=f32) + bk_ref[...]).astype(bf16)
    v = (jnp.dot(xnb, wv_ref[...], preferred_element_type=f32) + bv_ref[...]).astype(bf16)

    # Phase 1: all (batch, head) score tiles, then ONE batched softmax over the
    # stacked (bb*heads*N, N) slab (single max/exp/sum/divide instead of bb*heads).
    s_list = []
    for b in range(bb):                                  # static, small
        rs = slice(b * N, (b + 1) * N)
        for h in range(heads):                           # static unroll over heads
            cs = slice(h * dh, (h + 1) * dh)
            s_list.append(lax.dot_general(q[rs, cs], k[rs, cs], _NT_DIMS,
                                          preferred_element_type=f32))   # (N, N)
    s_all = s_list[0] if len(s_list) == 1 else jnp.concatenate(s_list, axis=0)
    s_all = s_all - jnp.max(s_all, axis=-1, keepdims=True)
    e_all = jnp.exp(s_all)
    p_all = (e_all / jnp.sum(e_all, axis=-1, keepdims=True)).astype(bf16)  # exact divide

    # Phase 2: fuse the projection into the per-head loop:
    #   attn_b = sum_h (prob_h @ v_h) @ proj_w[h*dh:(h+1)*dh, :]
    # -> no masked 8-lane scatters into a scratch slab, no VMEM round trip.
    projw = projw_ref[...]                               # f32 (C, C); 8-row slices aligned
    attn_rows = []
    for b in range(bb):
        rs = slice(b * N, (b + 1) * N)
        acc_b = jnp.zeros((N, C), f32)
        for h in range(heads):
            cs = slice(h * dh, (h + 1) * dh)
            idx = b * heads + h
            prob = p_all[idx * N:(idx + 1) * N, :]       # (N, N) bf16
            oh = jnp.dot(prob, v[rs, cs], preferred_element_type=f32)          # (N, dh)
            acc_b = acc_b + jnp.dot(oh, projw[h * dh:(h + 1) * dh, :],
                                    preferred_element_type=f32)                # (N, C)
        attn_rows.append(acc_b)
    attn = attn_rows[0] if bb == 1 else jnp.concatenate(attn_rows, axis=0)
    x = attn + projb_ref[...] + x                        # residual 1

    # ---- MLP branch: LN2 -> fc1 -> GELU -> fc2 (dropout_prob=0.0 => identity) ----
    xn2 = _layernorm(x, ln2w_ref[...], ln2b_ref[...])
    h1 = jnp.dot(xn2.astype(bf16), fc1w_ref[...], preferred_element_type=f32) + fc1b_ref[...]
    h1 = _gelu_exact(h1)
    h2 = jnp.dot(h1.astype(bf16), fc2w_ref[...], preferred_element_type=f32) + fc2b_ref[...]
    out_ref[...] = (x + h2).reshape(bb, N, C)            # residual 2


# --------------------------------- wrapper ------------------------------------

def transformer_block(x, params, *, heads, batch_block=None):
    B, N, C = x.shape
    assert C % heads == 0
    dh = C // heads
    mlp_dim = params["fc1_w"].shape[1]
    f32, bf16 = jnp.float32, jnp.bfloat16

    # Grid: expose >=2 "parallel" grid steps when possible so the v7x megacore can
    # shard the batch across its two TensorCores.  Single-TC chips (v5e/v6e) can
    # pass batch_block=B to fuse the whole batch into one step (bigger row blocks).
    if batch_block is None:
        batch_block = B // 2 if (B >= 2 and B % 2 == 0 and N % 8 == 0) else 1
    if N % 8 != 0:
        batch_block = 1          # keep the in-kernel (bb*N, C) reshape layout-free
    assert B % batch_block == 0
    grid = (B // batch_block,)

    # Host-side weight prep (free):
    #   * split fused qkv into lane-aligned (C, C)/(1, C) slabs,
    #   * fold the dh**-0.5 attention scale into wq / bq,
    #   * cast matmul weights to bf16 (MXU-native); proj_w stays f32 so its
    #     per-head 8-row sublane slices stay tile-aligned at this dh.
    scale = dh ** -0.5
    qkv_w, qkv_b = params["qkv_w"], params["qkv_b"]
    wq = (qkv_w[:, 0 * C:1 * C] * scale).astype(bf16)
    wk = qkv_w[:, 1 * C:2 * C].astype(bf16)
    wv = qkv_w[:, 2 * C:3 * C].astype(bf16)
    bq = (qkv_b[:, 0 * C:1 * C] * scale).astype(f32)
    bk = qkv_b[:, 1 * C:2 * C].astype(f32)
    bv = qkv_b[:, 2 * C:3 * C].astype(f32)
    proj_w = params["proj_w"].astype(f32)
    fc1_w = params["fc1_w"].astype(bf16)
    fc2_w = params["fc2_w"].astype(bf16)

    def full(shape):
        return pl.BlockSpec(shape, lambda b: (0,) * len(shape))

    in_specs = [
        pl.BlockSpec((batch_block, N, C), lambda b: (b, 0, 0)),   # x
        full((1, C)), full((1, C)),                               # ln1 w, b
        full((C, C)), full((1, C)),                               # q    w, b (scale folded)
        full((C, C)), full((1, C)),                               # k    w, b
        full((C, C)), full((1, C)),                               # v    w, b
        full((C, C)), full((1, C)),                               # proj w, b (f32)
        full((1, C)), full((1, C)),                               # ln2 w, b
        full((C, mlp_dim)), full((1, mlp_dim)),                   # fc1  w, b
        full((mlp_dim, C)), full((1, C)),                         # fc2  w, b
    ]
    out_spec = pl.BlockSpec((batch_block, N, C), lambda b: (b, 0, 0))

    # VMEM budget derived from the actual footprint (double-buffered activation
    # blocks + double-buffered resident weights + slack) instead of a fixed 48 MiB;
    # capped below v7x's 64 MiB physical VMEM.
    act_bytes = batch_block * N * C * 4
    weight_bytes = (3 * C * C + C * mlp_dim + mlp_dim * C) * 2 + C * C * 4
    small_bytes = (8 * C + mlp_dim) * 4
    footprint = 2 * 2 * act_bytes + 2 * (weight_bytes + small_bytes)
    vmem_limit = min(48 * 1024 * 1024, max(8 * 1024 * 1024, 2 * footprint))

    kernel = functools.partial(transformer_block_kernel, heads=heads)
    return pl.pallas_call(
        kernel,
        out_shape=jax.ShapeDtypeStruct((B, N, C), x.dtype),
        grid=grid,
        in_specs=in_specs,
        out_specs=out_spec,
        compiler_params=pltpu.CompilerParams(
            dimension_semantics=("parallel",),
            vmem_limit_bytes=vmem_limit,
        ),
    )(x, params["ln1_w"], params["ln1_b"], wq, bq, wk, bk, wv, bv,
      proj_w, params["proj_b"], params["ln2_w"], params["ln2_b"],
      fc1_w, params["fc1_b"], fc2_w, params["fc2_b"])


# -------------------------- pure-JAX reference (torch semantics) --------------

def reference(x, params, *, heads):
    hp = jax.lax.Precision.HIGHEST

    def ln(y, w, b):
        mu = y.mean(-1, keepdims=True)
        var = ((y - mu) ** 2).mean(-1, keepdims=True)
        return (y - mu) / jnp.sqrt(var + 1e-6) * w + b

    B, N, C = x.shape
    dh = C // heads
    xn = ln(x, params["ln1_w"][0], params["ln1_b"][0])
    qkv = jnp.matmul(xn, params["qkv_w"], precision=hp) + params["qkv_b"][0]
    qkv = qkv.reshape(B, N, 3, heads, dh).transpose(2, 0, 3, 1, 4)
    q, k, v = qkv[0], qkv[1], qkv[2]
    attn = jnp.matmul(q, jnp.swapaxes(k, -2, -1), precision=hp) * (dh ** -0.5)
    attn = jax.nn.softmax(attn, axis=-1)
    out = jnp.matmul(attn, v, precision=hp).transpose(0, 2, 1, 3).reshape(B, N, C)
    out = jnp.matmul(out, params["proj_w"], precision=hp) + params["proj_b"][0]
    x = out + x
    xn = ln(x, params["ln2_w"][0], params["ln2_b"][0])
    h = jax.nn.gelu(jnp.matmul(xn, params["fc1_w"], precision=hp) + params["fc1_b"][0],
                    approximate=False)
    h = jnp.matmul(h, params["fc2_w"], precision=hp) + params["fc2_b"][0]
    return x + h


# ------------------------------------ main -------------------------------------

if __name__ == "__main__":
    B, N, C, heads, mlp_dim = 2, 16, 64, 8, 128

    key = jax.random.PRNGKey(0)
    keys = jax.random.split(key, 10)
    w = lambda k, shp: (0.02 * jax.random.normal(k, shp)).astype(jnp.float32)

    params = {
        "ln1_w": jnp.ones((1, C), jnp.float32),
        "ln1_b": jnp.zeros((1, C), jnp.float32),
        "qkv_w": w(keys[0], (C, 3 * C)),            # pre-transposed: y = x @ W + b
        "qkv_b": w(keys[1], (1, 3 * C)),
        "proj_w": w(keys[2], (C, C)),
        "proj_b": w(keys[3], (1, C)),
        "ln2_w": jnp.ones((1, C), jnp.float32),
        "ln2_b": jnp.zeros((1, C), jnp.float32),
        "fc1_w": w(keys[4], (C, mlp_dim)),
        "fc1_b": w(keys[5], (1, mlp_dim)),
        "fc2_w": w(keys[6], (mlp_dim, C)),
        "fc2_b": w(keys[7], (1, C)),
    }
    x = jax.random.normal(keys[8], (B, N, C), jnp.float32)

    out = transformer_block(x, params, heads=heads)
    out = jax.block_until_ready(out)

    ref = reference(x, params, heads=heads)
    assert out.shape == (B, N, C) and out.dtype == jnp.float32
    # bf16 MXU operands vs f32 HIGHEST-precision reference -> 2e-3 tolerance.
    assert jnp.allclose(out, ref, atol=2e-3, rtol=2e-3), float(jnp.max(jnp.abs(out - ref)))

    print("KERNEL_OK")
</pallas_src>

<mosaic_0001>
module attributes {stable_mosaic.version = 11 : i64} {
  func.func @transformer_block_kernel(%arg0: i32, %arg1: memref<1x16x64xf32, #tpu.memory_space<vmem>>, %arg2: memref<1x64xf32, #tpu.memory_space<vmem>>, %arg3: memref<1x64xf32, #tpu.memory_space<vmem>>, %arg4: memref<64x64xbf16, #tpu.memory_space<vmem>>, %arg5: memref<1x64xf32, #tpu.memory_space<vmem>>, %arg6: memref<64x64xbf16, #tpu.memory_space<vmem>>, %arg7: memref<1x64xf32, #tpu.memory_space<vmem>>, %arg8: memref<64x64xbf16, #tpu.memory_space<vmem>>, %arg9: memref<1x64xf32, #tpu.memory_space<vmem>>, %arg10: memref<64x64xf32, #tpu.memory_space<vmem>>, %arg11: memref<1x64xf32, #tpu.memory_space<vmem>>, %arg12: memref<1x64xf32, #tpu.memory_space<vmem>>, %arg13: memref<1x64xf32, #tpu.memory_space<vmem>>, %arg14: memref<64x128xbf16, #tpu.memory_space<vmem>>, %arg15: memref<1x128xf32, #tpu.memory_space<vmem>>, %arg16: memref<128x64xbf16, #tpu.memory_space<vmem>>, %arg17: memref<1x64xf32, #tpu.memory_space<vmem>>, %arg18: memref<1x16x64xf32, #tpu.memory_space<vmem>>) attributes {dimension_semantics = [#tpu.dimension_semantics<parallel>], iteration_bounds = array<i64: 2>, scalar_prefetch = 0 : i64, scratch_operands = 0 : i64, tpu.core_type = #tpu.core_type<tc>, window_params = [{transform_indices = @transform_0, window_bounds = array<i64: 1, 16, 64>}, {pipeline_mode = #tpu.pipeline_mode<synchronous>, transform_indices = @transform_1, window_bounds = array<i64: 1, 64>}, {pipeline_mode = #tpu.pipeline_mode<synchronous>, transform_indices = @transform_2, window_bounds = array<i64: 1, 64>}, {pipeline_mode = #tpu.pipeline_mode<synchronous>, transform_indices = @transform_3, window_bounds = array<i64: 64, 64>}, {pipeline_mode = #tpu.pipeline_mode<synchronous>, transform_indices = @transform_4, window_bounds = array<i64: 1, 64>}, {pipeline_mode = #tpu.pipeline_mode<synchronous>, transform_indices = @transform_5, window_bounds = array<i64: 64, 64>}, {pipeline_mode = #tpu.pipeline_mode<synchronous>, transform_indices = @transform_6, window_bounds = array<i64: 1, 64>}, {pipeline_mode = #tpu.pipeline_mode<synchronous>, transform_indices = @transform_7, window_bounds = array<i64: 64, 64>}, {pipeline_mode = #tpu.pipeline_mode<synchronous>, transform_indices = @transform_8, window_bounds = array<i64: 1, 64>}, {pipeline_mode = #tpu.pipeline_mode<synchronous>, transform_indices = @transform_9, window_bounds = array<i64: 64, 64>}, {pipeline_mode = #tpu.pipeline_mode<synchronous>, transform_indices = @transform_10, window_bounds = array<i64: 1, 64>}, {pipeline_mode = #tpu.pipeline_mode<synchronous>, transform_indices = @transform_11, window_bounds = array<i64: 1, 64>}, {pipeline_mode = #tpu.pipeline_mode<synchronous>, transform_indices = @transform_12, window_bounds = array<i64: 1, 64>}, {pipeline_mode = #tpu.pipeline_mode<synchronous>, transform_indices = @transform_13, window_bounds = array<i64: 64, 128>}, {pipeline_mode = #tpu.pipeline_mode<synchronous>, transform_indices = @transform_14, window_bounds = array<i64: 1, 128>}, {pipeline_mode = #tpu.pipeline_mode<synchronous>, transform_indices = @transform_15, window_bounds = array<i64: 128, 64>}, {pipeline_mode = #tpu.pipeline_mode<synchronous>, transform_indices = @transform_16, window_bounds = array<i64: 1, 64>}, {transform_indices = @transform_17, window_bounds = array<i64: 1, 16, 64>}]} {
    %c0 = arith.constant 0 : index
    %c0_0 = arith.constant 0 : index
    %c0_1 = arith.constant 0 : index
    %0 = vector.load %arg1[%c0, %c0_0, %c0_1] : memref<1x16x64xf32, #tpu.memory_space<vmem>>, vector<1x16x64xf32>
    %1 = vector.shape_cast %0 : vector<1x16x64xf32> to vector<16x64xf32>
    %c0_2 = arith.constant 0 : index
    %c0_3 = arith.constant 0 : index
    %2 = vector.load %arg2[%c0_2, %c0_3] : memref<1x64xf32, #tpu.memory_space<vmem>>, vector<1x64xf32>
    %c0_4 = arith.constant 0 : index
    %c0_5 = arith.constant 0 : index
    %3 = vector.load %arg3[%c0_4, %c0_5] : memref<1x64xf32, #tpu.memory_space<vmem>>, vector<1x64xf32>
    %cst = arith.constant dense<0.000000e+00> : vector<16xf32>
    %4 = vector.multi_reduction <add>, %1, %cst [1] : vector<16x64xf32> to vector<16xf32>
    %5 = vector.shape_cast %4 : vector<16xf32> to vector<16x1xf32>
    %cst_6 = arith.constant 6.400000e+01 : f32
    %6 = vector.broadcast %cst_6 : f32 to vector<16x1xf32>
    %7 = arith.divf %5, %6 : vector<16x1xf32>
    %8 = vector.broadcast %7 : vector<16x1xf32> to vector<16x64xf32>
    %9 = arith.subf %1, %8 : vector<16x64xf32>
    %10 = arith.mulf %9, %9 : vector<16x64xf32>
    %cst_7 = arith.constant dense<0.000000e+00> : vector<16xf32>
    %11 = vector.multi_reduction <add>, %10, %cst_7 [1] : vector<16x64xf32> to vector<16xf32>
    %12 = vector.shape_cast %11 : vector<16xf32> to vector<16x1xf32>
    %cst_8 = arith.constant 6.400000e+01 : f32
    %13 = vector.broadcast %cst_8 : f32 to vector<16x1xf32>
    %14 = arith.divf %12, %13 : vector<16x1xf32>
    %15 = vector.broadcast %7 : vector<16x1xf32> to vector<16x64xf32>
    %16 = arith.subf %1, %15 : vector<16x64xf32>
    %cst_9 = arith.constant 9.99999997E-7 : f32
    %17 = vector.broadcast %cst_9 : f32 to vector<16x1xf32>
    %18 = arith.addf %14, %17 : vector<16x1xf32>
    %19 = math.rsqrt %18 : vector<16x1xf32>
    %20 = vector.broadcast %19 : vector<16x1xf32> to vector<16x64xf32>
    %21 = arith.mulf %16, %20 : vector<16x64xf32>
    %22 = vector.broadcast %2 : vector<1x64xf32> to vector<16x64xf32>
    %23 = arith.mulf %21, %22 : vector<16x64xf32>
    %24 = vector.broadcast %3 : vector<1x64xf32> to vector<16x64xf32>
    %25 = arith.addf %23, %24 : vector<16x64xf32>
    %26 = arith.truncf %25 : vector<16x64xf32> to vector<16x64xbf16>
    %c0_10 = arith.constant 0 : index
    %c0_11 = arith.constant 0 : index
    %27 = vector.load %arg4[%c0_10, %c0_11] : memref<64x64xbf16, #tpu.memory_space<vmem>>, vector<64x64xbf16>
    %cst_12 = arith.constant dense<0.000000e+00> : vector<16x64xf32>
    %28 = tpu.matmul %26, %27, %cst_12 {dimension_numbers = #tpu.dot_dimension_numbers<[1], [0], [0], [1], [0, 0, 1, 1], [], []>} : vector<16x64xbf16>, vector<64x64xbf16>, vector<16x64xf32> -> vector<16x64xf32>
    %c0_13 = arith.constant 0 : index
    %c0_14 = arith.constant 0 : index
    %29 = vector.load %arg5[%c0_13, %c0_14] : memref<1x64xf32, #tpu.memory_space<vmem>>, vector<1x64xf32>
    %30 = vector.broadcast %29 : vector<1x64xf32> to vector<16x64xf32>
    %31 = arith.addf %28, %30 : vector<16x64xf32>
    %32 = arith.truncf %31 : vector<16x64xf32> to vector<16x64xbf16>
    %c0_15 = arith.constant 0 : index
    %c0_16 = arith.constant 0 : index
    %33 = vector.load %arg6[%c0_15, %c0_16] : memref<64x64xbf16, #tpu.memory_space<vmem>>, vector<64x64xbf16>
    %cst_17 = arith.constant dense<0.000000e+00> : vector<16x64xf32>
    %34 = tpu.matmul %26, %33, %cst_17 {dimension_numbers = #tpu.dot_dimension_numbers<[1], [0], [0], [1], [0, 0, 1, 1], [], []>} : vector<16x64xbf16>, vector<64x64xbf16>, vector<16x64xf32> -> vector<16x64xf32>
    %c0_18 = arith.constant 0 : index
    %c0_19 = arith.constant 0 : index
    %35 = vector.load %arg7[%c0_18, %c0_19] : memref<1x64xf32, #tpu.memory_space<vmem>>, vector<1x64xf32>
    %36 = vector.broadcast %35 : vector<1x64xf32> to vector<16x64xf32>
    %37 = arith.addf %34, %36 : vector<16x64xf32>
    %38 = arith.truncf %37 : vector<16x64xf32> to vector<16x64xbf16>
    %c0_20 = arith.constant 0 : index
    %c0_21 = arith.constant 0 : index
    %39 = vector.load %arg8[%c0_20, %c0_21] : memref<64x64xbf16, #tpu.memory_space<vmem>>, vector<64x64xbf16>
    %cst_22 = arith.constant dense<0.000000e+00> : vector<16x64xf32>
    %40 = tpu.matmul %26, %39, %cst_22 {dimension_numbers = #tpu.dot_dimension_numbers<[1], [0], [0], [1], [0, 0, 1, 1], [], []>} : vector<16x64xbf16>, vector<64x64xbf16>, vector<16x64xf32> -> vector<16x64xf32>
    %c0_23 = arith.constant 0 : index
    %c0_24 = arith.constant 0 : index
    %41 = vector.load %arg9[%c0_23, %c0_24] : memref<1x64xf32, #tpu.memory_space<vmem>>, vector<1x64xf32>
    %42 = vector.broadcast %41 : vector<1x64xf32> to vector<16x64xf32>
    %43 = arith.addf %40, %42 : vector<16x64xf32>
    %44 = arith.truncf %43 : vector<16x64xf32> to vector<16x64xbf16>
    %45 = vector.extract_strided_slice %32 {offsets = [0, 0], sizes = [16, 8], strides = [1, 1]} : vector<16x64xbf16> to vector<16x8xbf16>
    %46 = vector.extract_strided_slice %38 {offsets = [0, 0], sizes = [16, 8], strides = [1, 1]} : vector<16x64xbf16> to vector<16x8xbf16>
    %cst_25 = arith.constant dense<0.000000e+00> : vector<16x16xf32>
    %47 = tpu.matmul %45, %46, %cst_25 {dimension_numbers = #tpu.dot_dimension_numbers<[1], [1], [0], [0], [0, 0, 1, 0], [], []>} : vector<16x8xbf16>, vector<16x8xbf16>, vector<16x16xf32> -> vector<16x16xf32>
    %48 = vector.extract_strided_slice %32 {offsets = [0, 8], sizes = [16, 8], strides = [1, 1]} : vector<16x64xbf16> to vector<16x8xbf16>
    %49 = vector.extract_strided_slice %38 {offsets = [0, 8], sizes = [16, 8], strides = [1, 1]} : vector<16x64xbf16> to vector<16x8xbf16>
    %cst_26 = arith.constant dense<0.000000e+00> : vector<16x16xf32>
    %50 = tpu.matmul %48, %49, %cst_26 {dimension_numbers = #tpu.dot_dimension_numbers<[1], [1], [0], [0], [0, 0, 1, 0], [], []>} : vector<16x8xbf16>, vector<16x8xbf16>, vector<16x16xf32> -> vector<16x16xf32>
    %51 = vector.extract_strided_slice %32 {offsets = [0, 16], sizes = [16, 8], strides = [1, 1]} : vector<16x64xbf16> to vector<16x8xbf16>
    %52 = vector.extract_strided_slice %38 {offsets = [0, 16], sizes = [16, 8], strides = [1, 1]} : vector<16x64xbf16> to vector<16x8xbf16>
    %cst_27 = arith.constant dense<0.000000e+00> : vector<16x16xf32>
    %53 = tpu.matmul %51, %52, %cst_27 {dimension_numbers = #tpu.dot_dimension_numbers<[1], [1], [0], [0], [0, 0, 1, 0], [], []>} : vector<16x8xbf16>, vector<16x8xbf16>, vector<16x16xf32> -> vector<16x16xf32>
    %54 = vector.extract_strided_slice %32 {offsets = [0, 24], sizes = [16, 8], strides = [1, 1]} : vector<16x64xbf16> to vector<16x8xbf16>
    %55 = vector.extract_strided_slice %38 {offsets = [0, 24], sizes = [16, 8], strides = [1, 1]} : vector<16x64xbf16> to vector<16x8xbf16>
    %cst_28 = arith.constant dense<0.000000e+00> : vector<16x16xf32>
    %56 = tpu.matmul %54, %55, %cst_28 {dimension_numbers = #tpu.dot_dimension_numbers<[1], [1], [0], [0], [0, 0, 1, 0], [], []>} : vector<16x8xbf16>, vector<16x8xbf16>, vector<16x16xf32> -> vector<16x16xf32>
    %57 = vector.extract_strided_slice %32 {offsets = [0, 32], sizes = [16, 8], strides = [1, 1]} : vector<16x64xbf16> to vector<16x8xbf16>
    %58 = vector.extract_strided_slice %38 {offsets = [0, 32], sizes = [16, 8], strides = [1, 1]} : vector<16x64xbf16> to vector<16x8xbf16>
    %cst_29 = arith.constant dense<0.000000e+00> : vector<16x16xf32>
    %59 = tpu.matmul %57, %58, %cst_29 {dimension_numbers = #tpu.dot_dimension_numbers<[1], [1], [0], [0], [0, 0, 1, 0], [], []>} : vector<16x8xbf16>, vector<16x8xbf16>, vector<16x16xf32> -> vector<16x16xf32>
    %60 = vector.extract_strided_slice %32 {offsets = [0, 40], sizes = [16, 8], strides = [1, 1]} : vector<16x64xbf16> to vector<16x8xbf16>
    %61 = vector.extract_strided_slice %38 {offsets = [0, 40], sizes = [16, 8], strides = [1, 1]} : vector<16x64xbf16> to vector<16x8xbf16>
    %cst_30 = arith.constant dense<0.000000e+00> : vector<16x16xf32>
    %62 = tpu.matmul %60, %61, %cst_30 {dimension_numbers = #tpu.dot_dimension_numbers<[1], [1], [0], [0], [0, 0, 1, 0], [], []>} : vector<16x8xbf16>, vector<16x8xbf16>, vector<16x16xf32> -> vector<16x16xf32>
    %63 = vector.extract_strided_slice %32 {offsets = [0, 48], sizes = [16, 8], strides = [1, 1]} : vector<16x64xbf16> to vector<16x8xbf16>
    %64 = vector.extract_strided_slice %38 {offsets = [0, 48], sizes = [16, 8], strides = [1, 1]} : vector<16x64xbf16> to vector<16x8xbf16>
    %cst_31 = arith.constant dense<0.000000e+00> : vector<16x16xf32>
    %65 = tpu.matmul %63, %64, %cst_31 {dimension_numbers = #tpu.dot_dimension_numbers<[1], [1], [0], [0], [0, 0, 1, 0], [], []>} : vector<16x8xbf16>, vector<16x8xbf16>, vector<16x16xf32> -> vector<16x16xf32>
    %66 = vector.extract_strided_slice %32 {offsets = [0, 56], sizes = [16, 8], strides = [1, 1]} : vector<16x64xbf16> to vector<16x8xbf16>
    %67 = vector.extract_strided_slice %38 {offsets = [0, 56], sizes = [16, 8], strides = [1, 1]} : vector<16x64xbf16> to vector<16x8xbf16>
    %cst_32 = arith.constant dense<0.000000e+00> : vector<16x16xf32>
    %68 = tpu.matmul %66, %67, %cst_32 {dimension_numbers = #tpu.dot_dimension_numbers<[1], [1], [0], [0], [0, 0, 1, 0], [], []>} : vector<16x8xbf16>, vector<16x8xbf16>, vector<16x16xf32> -> vector<16x16xf32>
    %69 = tpu.concatenate %47, %50, %53, %56, %59, %62, %65, %68 in 0 : vector<16x16xf32>, vector<16x16xf32>, vector<16x16xf32>, vector<16x16xf32>, vector<16x16xf32>, vector<16x16xf32>, vector<16x16xf32>, vector<16x16xf32> -> vector<128x16xf32>
    %cst_33 = arith.constant dense<0xFF800000> : vector<128xf32>
    %70 = vector.multi_reduction <maximumf>, %69, %cst_33 [1] : vector<128x16xf32> to vector<128xf32>
    %71 = vector.shape_cast %70 : vector<128xf32> to vector<128x1xf32>
    %72 = vector.broadcast %71 : vector<128x1xf32> to vector<128x16xf32>
    %73 = arith.subf %69, %72 : vector<128x16xf32>
    %74 = math.exp %73 : vector<128x16xf32>
    %cst_34 = arith.constant dense<0.000000e+00> : vector<128xf32>
    %75 = vector.multi_reduction <add>, %74, %cst_34 [1] : vector<128x16xf32> to vector<128xf32>
    %76 = vector.shape_cast %75 : vector<128xf32> to vector<128x1xf32>
    %77 = vector.broadcast %76 : vector<128x1xf32> to vector<128x16xf32>
    %78 = arith.divf %74, %77 : vector<128x16xf32>
    %79 = arith.truncf %78 : vector<128x16xf32> to vector<128x16xbf16>
    %c0_35 = arith.constant 0 : index
    %c0_36 = arith.constant 0 : index
    %80 = vector.load %arg10[%c0_35, %c0_36] : memref<64x64xf32, #tpu.memory_space<vmem>>, vector<64x64xf32>
    %cst_37 = arith.constant 0.000000e+00 : f32
    %81 = vector.broadcast %cst_37 : f32 to vector<16x64xf32>
    %82 = vector.extract_strided_slice %79 {offsets = [0, 0], sizes = [16, 16], strides = [1, 1]} : vector<128x16xbf16> to vector<16x16xbf16>
    %83 = vector.extract_strided_slice %44 {offsets = [0, 0], sizes = [16, 8], strides = [1, 1]} : vector<16x64xbf16> to vector<16x8xbf16>
    %cst_38 = arith.constant dense<0.000000e+00> : vector<16x8xf32>
    %84 = tpu.matmul %82, %83, %cst_38 {dimension_numbers = #tpu.dot_dimension_numbers<[1], [0], [0], [1], [0, 0, 1, 1], [], []>} : vector<16x16xbf16>, vector<16x8xbf16>, vector<16x8xf32> -> vector<16x8xf32>
    %85 = vector.extract_strided_slice %80 {offsets = [0, 0], sizes = [8, 64], strides = [1, 1]} : vector<64x64xf32> to vector<8x64xf32>
    %cst_39 = arith.constant dense<0.000000e+00> : vector<16x64xf32>
    %86 = tpu.matmul %84, %85, %cst_39 {dimension_numbers = #tpu.dot_dimension_numbers<[1], [0], [0], [1], [0, 0, 1, 1], [], []>} : vector<16x8xf32>, vector<8x64xf32>, vector<16x64xf32> -> vector<16x64xf32>
    %87 = arith.addf %81, %86 : vector<16x64xf32>
    %88 = vector.extract_strided_slice %79 {offsets = [16, 0], sizes = [16, 16], strides = [1, 1]} : vector<128x16xbf16> to vector<16x16xbf16>
    %89 = vector.extract_strided_slice %44 {offsets = [0, 8], sizes = [16, 8], strides = [1, 1]} : vector<16x64xbf16> to vector<16x8xbf16>
    %cst_40 = arith.constant dense<0.000000e+00> : vector<16x8xf32>
    %90 = tpu.matmul %88, %89, %cst_40 {dimension_numbers = #tpu.dot_dimension_numbers<[1], [0], [0], [1], [0, 0, 1, 1], [], []>} : vector<16x16xbf16>, vector<16x8xbf16>, vector<16x8xf32> -> vector<16x8xf32>
    %91 = vector.extract_strided_slice %80 {offsets = [8, 0], sizes = [8, 64], strides = [1, 1]} : vector<64x64xf32> to vector<8x64xf32>
    %cst_41 = arith.constant dense<0.000000e+00> : vector<16x64xf32>
    %92 = tpu.matmul %90, %91, %cst_41 {dimension_numbers = #tpu.dot_dimension_numbers<[1], [0], [0], [1], [0, 0, 1, 1], [], []>} : vector<16x8xf32>, vector<8x64xf32>, vector<16x64xf32> -> vector<16x64xf32>
    %93 = arith.addf %87, %92 : vector<16x64xf32>
    %94 = vector.extract_strided_slice %79 {offsets = [32, 0], sizes = [16, 16], strides = [1, 1]} : vector<128x16xbf16> to vector<16x16xbf16>
    %95 = vector.extract_strided_slice %44 {offsets = [0, 16], sizes = [16, 8], strides = [1, 1]} : vector<16x64xbf16> to vector<16x8xbf16>
    %cst_42 = arith.constant dense<0.000000e+00> : vector<16x8xf32>
    %96 = tpu.matmul %94, %95, %cst_42 {dimension_numbers = #tpu.dot_dimension_numbers<[1], [0], [0], [1], [0, 0, 1, 1], [], []>} : vector<16x16xbf16>, vector<16x8xbf16>, vector<16x8xf32> -> vector<16x8xf32>
    %97 = vector.extract_strided_slice %80 {offsets = [16, 0], sizes = [8, 64], strides = [1, 1]} : vector<64x64xf32> to vector<8x64xf32>
    %cst_43 = arith.constant dense<0.000000e+00> : vector<16x64xf32>
    %98 = tpu.matmul %96, %97, %cst_43 {dimension_numbers = #tpu.dot_dimension_numbers<[1], [0], [0], [1], [0, 0, 1, 1], [], []>} : vector<16x8xf32>, vector<8x64xf32>, vector<16x64xf32> -> vector<16x64xf32>
    %99 = arith.addf %93, %98 : vector<16x64xf32>
    %100 = vector.extract_strided_slice %79 {offsets = [48, 0], sizes = [16, 16], strides = [1, 1]} : vector<128x16xbf16> to vector<16x16xbf16>
    %101 = vector.extract_strided_slice %44 {offsets = [0, 24], sizes = [16, 8], strides = [1, 1]} : vector<16x64xbf16> to vector<16x8xbf16>
    %cst_44 = arith.constant dense<0.000000e+00> : vector<16x8xf32>
    %102 = tpu.matmul %100, %101, %cst_44 {dimension_numbers = #tpu.dot_dimension_numbers<[1], [0], [0], [1], [0, 0, 1, 1], [], []>} : vector<16x16xbf16>, vector<16x8xbf16>, vector<16x8xf32> -> vector<16x8xf32>
    %103 = vector.extract_strided_slice %80 {offsets = [24, 0], sizes = [8, 64], strides = [1, 1]} : vector<64x64xf32> to vector<8x64xf32>
    %cst_45 = arith.constant dense<0.000000e+00> : vector<16x64xf32>
    %104 = tpu.matmul %102, %103, %cst_45 {dimension_numbers = #tpu.dot_dimension_numbers<[1], [0], [0], [1], [0, 0, 1, 1], [], []>} : vector<16x8xf32>, vector<8x64xf32>, vector<16x64xf32> -> vector<16x64xf32>
    %105 = arith.addf %99, %104 : vector<16x64xf32>
    %106 = vector.extract_strided_slice %79 {offsets = [64, 0], sizes = [16, 16], strides = [1, 1]} : vector<128x16xbf16> to vector<16x16xbf16>
    %107 = vector.extract_strided_slice %44 {offsets = [0, 32], sizes = [16, 8], strides = [1, 1]} : vector<16x64xbf16> to vector<16x8xbf16>
    %cst_46 = arith.constant dense<0.000000e+00> : vector<16x8xf32>
    %108 = tpu.matmul %106, %107, %cst_46 {dimension_numbers = #tpu.dot_dimension_numbers<[1], [0], [0], [1], [0, 0, 1, 1], [], []>} : vector<16x16xbf16>, vector<16x8xbf16>, vector<16x8xf32> -> vector<16x8xf32>
    %109 = vector.extract_strided_slice %80 {offsets = [32, 0], sizes = [8, 64], strides = [1, 1]} : vector<64x64xf32> to vector<8x64xf32>
    %cst_47 = arith.constant dense<0.000000e+00> : vector<16x64xf32>
    %110 = tpu.matmul %108, %109, %cst_47 {dimension_numbers = #tpu.dot_dimension_numbers<[1], [0], [0], [1], [0, 0, 1, 1], [], []>} : vector<16x8xf32>, vector<8x64xf32>, vector<16x64xf32> -> vector<16x64xf32>
    %111 = arith.addf %105, %110 : vector<16x64xf32>
    %112 = vector.extract_strided_slice %79 {offsets = [80, 0], sizes = [16, 16], strides = [1, 1]} : vector<128x16xbf16> to vector<16x16xbf16>
    %113 = vector.extract_strided_slice %44 {offsets = [0, 40], sizes = [16, 8], strides = [1, 1]} : vector<16x64xbf16> to vector<16x8xbf16>
    %cst_48 = arith.constant dense<0.000000e+00> : vector<16x8xf32>
    %114 = tpu.matmul %112, %113, %cst_48 {dimension_numbers = #tpu.dot_dimension_numbers<[1], [0], [0], [1], [0, 0, 1, 1], [], []>} : vector<16x16xbf16>, vector<16x8xbf16>, vector<16x8xf32> -> vector<16x8xf32>
    %115 = vector.extract_strided_slice %80 {offsets = [40, 0], sizes = [8, 64], strides = [1, 1]} : vector<64x64xf32> to vector<8x64xf32>
    %cst_49 = arith.constant dense<0.000000e+00> : vector<16x64xf32>
    %116 = tpu.matmul %114, %115, %cst_49 {dimension_numbers = #tpu.dot_dimension_numbers<[1], [0], [0], [1], [0, 0, 1, 1], [], []>} : vector<16x8xf32>, vector<8x64xf32>, vector<16x64xf32> -> vector<16x64xf32>
    %117 = arith.addf %111, %116 : vector<16x64xf32>
    %118 = vector.extract_strided_slice %79 {offsets = [96, 0], sizes = [16, 16], strides = [1, 1]} : vector<128x16xbf16> to vector<16x16xbf16>
    %119 = vector.extract_strided_slice %44 {offsets = [0, 48], sizes = [16, 8], strides = [1, 1]} : vector<16x64xbf16> to vector<16x8xbf16>
    %cst_50 = arith.constant dense<0.000000e+00> : vector<16x8xf32>
    %120 = tpu.matmul %118, %119, %cst_50 {dimension_numbers = #tpu.dot_dimension_numbers<[1], [0], [0], [1], [0, 0, 1, 1], [], []>} : vector<16x16xbf16>, vector<16x8xbf16>, vector<16x8xf32> -> vector<16x8xf32>
    %121 = vector.extract_strided_slice %80 {offsets = [48, 0], sizes = [8, 64], strides = [1, 1]} : vector<64x64xf32> to vector<8x64xf32>
    %cst_51 = arith.constant dense<0.000000e+00> : vector<16x64xf32>
    %122 = tpu.matmul %120, %121, %cst_51 {dimension_numbers = #tpu.dot_dimension_numbers<[1], [0], [0], [1], [0, 0, 1, 1], [], []>} : vector<16x8xf32>, vector<8x64xf32>, vector<16x64xf32> -> vector<16x64xf32>
    %123 = arith.addf %117, %122 : vector<16x64xf32>
    %124 = vector.extract_strided_slice %79 {offsets = [112, 0], sizes = [16, 16], strides = [1, 1]} : vector<128x16xbf16> to vector<16x16xbf16>
    %125 = vector.extract_strided_slice %44 {offsets = [0, 56], sizes = [16, 8], strides = [1, 1]} : vector<16x64xbf16> to vector<16x8xbf16>
    %cst_52 = arith.constant dense<0.000000e+00> : vector<16x8xf32>
    %126 = tpu.matmul %124, %125, %cst_52 {dimension_numbers = #tpu.dot_dimension_numbers<[1], [0], [0], [1], [0, 0, 1, 1], [], []>} : vector<16x16xbf16>, vector<16x8xbf16>, vector<16x8xf32> -> vector<16x8xf32>
    %127 = vector.extract_strided_slice %80 {offsets = [56, 0], sizes = [8, 64], strides = [1, 1]} : vector<64x64xf32> to vector<8x64xf32>
    %cst_53 = arith.constant dense<0.000000e+00> : vector<16x64xf32>
    %128 = tpu.matmul %126, %127, %cst_53 {dimension_numbers = #tpu.dot_dimension_numbers<[1], [0], [0], [1], [0, 0, 1, 1], [], []>} : vector<16x8xf32>, vector<8x64xf32>, vector<16x64xf32> -> vector<16x64xf32>
    %129 = arith.addf %123, %128 : vector<16x64xf32>
    %c0_54 = arith.constant 0 : index
    %c0_55 = arith.constant 0 : index
    %130 = vector.load %arg11[%c0_54, %c0_55] : memref<1x64xf32, #tpu.memory_space<vmem>>, vector<1x64xf32>
    %131 = vector.broadcast %130 : vector<1x64xf32> to vector<16x64xf32>
    %132 = arith.addf %129, %131 : vector<16x64xf32>
    %133 = arith.addf %132, %1 : vector<16x64xf32>
    %c0_56 = arith.constant 0 : index
    %c0_57 = arith.constant 0 : index
    %134 = vector.load %arg12[%c0_56, %c0_57] : memref<1x64xf32, #tpu.memory_space<vmem>>, vector<1x64xf32>
    %c0_58 = arith.constant 0 : index
    %c0_59 = arith.constant 0 : index
    %135 = vector.load %arg13[%c0_58, %c0_59] : memref<1x64xf32, #tpu.memory_space<vmem>>, vector<1x64xf32>
    %cst_60 = arith.constant dense<0.000000e+00> : vector<16xf32>
    %136 = vector.multi_reduction <add>, %133, %cst_60 [1] : vector<16x64xf32> to vector<16xf32>
    %137 = vector.shape_cast %136 : vector<16xf32> to vector<16x1xf32>
    %cst_61 = arith.constant 6.400000e+01 : f32
    %138 = vector.broadcast %cst_61 : f32 to vector<16x1xf32>
    %139 = arith.divf %137, %138 : vector<16x1xf32>
    %140 = vector.broadcast %139 : vector<16x1xf32> to vector<16x64xf32>
    %141 = arith.subf %133, %140 : vector<16x64xf32>
    %142 = arith.mulf %141, %141 : vector<16x64xf32>
    %cst_62 = arith.constant dense<0.000000e+00> : vector<16xf32>
    %143 = vector.multi_reduction <add>, %142, %cst_62 [1] : vector<16x64xf32> to vector<16xf32>
    %144 = vector.shape_cast %143 : vector<16xf32> to vector<16x1xf32>
    %cst_63 = arith.constant 6.400000e+01 : f32
    %145 = vector.broadcast %cst_63 : f32 to vector<16x1xf32>
    %146 = arith.divf %144, %145 : vector<16x1xf32>
    %147 = vector.broadcast %139 : vector<16x1xf32> to vector<16x64xf32>
    %148 = arith.subf %133, %147 : vector<16x64xf32>
    %cst_64 = arith.constant 9.99999997E-7 : f32
    %149 = vector.broadcast %cst_64 : f32 to vector<16x1xf32>
    %150 = arith.addf %146, %149 : vector<16x1xf32>
    %151 = math.rsqrt %150 : vector<16x1xf32>
    %152 = vector.broadcast %151 : vector<16x1xf32> to vector<16x64xf32>
    %153 = arith.mulf %148, %152 : vector<16x64xf32>
    %154 = vector.broadcast %134 : vector<1x64xf32> to vector<16x64xf32>
    %155 = arith.mulf %153, %154 : vector<16x64xf32>
    %156 = vector.broadcast %135 : vector<1x64xf32> to vector<16x64xf32>
    %157 = arith.addf %155, %156 : vector<16x64xf32>
    %158 = arith.truncf %157 : vector<16x64xf32> to vector<16x64xbf16>
    %c0_65 = arith.constant 0 : index
    %c0_66 = arith.constant 0 : index
    %159 = vector.load %arg14[%c0_65, %c0_66] : memref<64x128xbf16, #tpu.memory_space<vmem>>, vector<64x128xbf16>
    %cst_67 = arith.constant dense<0.000000e+00> : vector<16x128xf32>
    %160 = tpu.matmul %158, %159, %cst_67 {dimension_numbers = #tpu.dot_dimension_numbers<[1], [0], [0], [1], [0, 0, 1, 1], [], []>} : vector<16x64xbf16>, vector<64x128xbf16>, vector<16x128xf32> -> vector<16x128xf32>
    %c0_68 = arith.constant 0 : index
    %c0_69 = arith.constant 0 : index
    %161 = vector.load %arg15[%c0_68, %c0_69] : memref<1x128xf32, #tpu.memory_space<vmem>>, vector<1x128xf32>
    %162 = vector.broadcast %161 : vector<1x128xf32> to vector<16x128xf32>
    %163 = arith.addf %160, %162 : vector<16x128xf32>
    %cst_70 = arith.constant 5.000000e-01 : f32
    %164 = vector.broadcast %cst_70 : f32 to vector<16x128xf32>
    %165 = arith.mulf %164, %163 : vector<16x128xf32>
    %cst_71 = arith.constant 0.707106769 : f32
    %166 = vector.broadcast %cst_71 : f32 to vector<16x128xf32>
    %167 = arith.mulf %163, %166 : vector<16x128xf32>
    %cst_72 = arith.constant 0.000000e+00 : f32
    %168 = vector.broadcast %cst_72 : f32 to vector<16x128xf32>
    %169 = arith.cmpf oge, %167, %168 : vector<16x128xf32>
    %cst_73 = arith.constant 1.000000e+00 : f32
    %cst_74 = arith.constant -1.000000e+00 : f32
    %170 = vector.broadcast %cst_73 : f32 to vector<16x128xf32>
    %171 = vector.broadcast %cst_74 : f32 to vector<16x128xf32>
    %172 = arith.select %169, %170, %171 : vector<16x128xi1>, vector<16x128xf32>
    %173 = math.absf %167 : vector<16x128xf32>
    %cst_75 = arith.constant 0.327591091 : f32
    %174 = vector.broadcast %cst_75 : f32 to vector<16x128xf32>
    %175 = arith.mulf %174, %173 : vector<16x128xf32>
    %cst_76 = arith.constant 1.000000e+00 : f32
    %176 = vector.broadcast %cst_76 : f32 to vector<16x128xf32>
    %177 = arith.addf %176, %175 : vector<16x128xf32>
    %178 = tpu.reciprocal %177 {approx = true} : vector<16x128xf32> -> vector<16x128xf32>
    %cst_77 = arith.constant 1.06140542 : f32
    %179 = vector.broadcast %cst_77 : f32 to vector<16x128xf32>
    %180 = arith.mulf %179, %178 : vector<16x128xf32>
    %cst_78 = arith.constant -1.45315206 : f32
    %181 = vector.broadcast %cst_78 : f32 to vector<16x128xf32>
    %182 = arith.addf %180, %181 : vector<16x128xf32>
    %183 = arith.mulf %182, %178 : vector<16x128xf32>
    %cst_79 = arith.constant 1.42141378 : f32
    %184 = vector.broadcast %cst_79 : f32 to vector<16x128xf32>
    %185 = arith.addf %183, %184 : vector<16x128xf32>
    %186 = arith.mulf %185, %178 : vector<16x128xf32>
    %cst_80 = arith.constant -0.284496725 : f32
    %187 = vector.broadcast %cst_80 : f32 to vector<16x128xf32>
    %188 = arith.addf %186, %187 : vector<16x128xf32>
    %189 = arith.mulf %188, %178 : vector<16x128xf32>
    %cst_81 = arith.constant 0.254829586 : f32
    %190 = vector.broadcast %cst_81 : f32 to vector<16x128xf32>
    %191 = arith.addf %189, %190 : vector<16x128xf32>
    %192 = arith.mulf %191, %178 : vector<16x128xf32>
    %cst_82 = arith.constant 0.000000e+00 : f32
    %193 = vector.broadcast %cst_82 : f32 to vector<16x128xf32>
    %194 = arith.subf %193, %173 : vector<16x128xf32>
    %195 = arith.mulf %194, %173 : vector<16x128xf32>
    %196 = math.exp %195 : vector<16x128xf32>
    %197 = arith.mulf %192, %196 : vector<16x128xf32>
    %cst_83 = arith.constant 1.000000e+00 : f32
    %198 = vector.broadcast %cst_83 : f32 to vector<16x128xf32>
    %199 = arith.subf %198, %197 : vector<16x128xf32>
    %200 = arith.mulf %172, %199 : vector<16x128xf32>
    %cst_84 = arith.constant 1.000000e+00 : f32
    %201 = vector.broadcast %cst_84 : f32 to vector<16x128xf32>
    %202 = arith.addf %201, %200 : vector<16x128xf32>
    %203 = arith.mulf %165, %202 : vector<16x128xf32>
    %204 = arith.truncf %203 : vector<16x128xf32> to vector<16x128xbf16>
    %c0_85 = arith.constant 0 : index
    %c0_86 = arith.constant 0 : index
    %205 = vector.load %arg16[%c0_85, %c0_86] : memref<128x64xbf16, #tpu.memory_space<vmem>>, vector<128x64xbf16>
    %cst_87 = arith.constant dense<0.000000e+00> : vector<16x64xf32>
    %206 = tpu.matmul %204, %205, %cst_87 {dimension_numbers = #tpu.dot_dimension_numbers<[1], [0], [0], [1], [0, 0, 1, 1], [], []>} : vector<16x128xbf16>, vector<128x64xbf16>, vector<16x64xf32> -> vector<16x64xf32>
    %c0_88 = arith.constant 0 : index
    %c0_89 = arith.constant 0 : index
    %207 = vector.load %arg17[%c0_88, %c0_89] : memref<1x64xf32, #tpu.memory_space<vmem>>, vector<1x64xf32>
    %208 = vector.broadcast %207 : vector<1x64xf32> to vector<16x64xf32>
    %209 = arith.addf %206, %208 : vector<16x64xf32>
    %210 = arith.addf %133, %209 : vector<16x64xf32>
    %211 = vector.shape_cast %210 : vector<16x64xf32> to vector<1x16x64xf32>
    %c0_90 = arith.constant 0 : index
    %c0_91 = arith.constant 0 : index
    %c0_92 = arith.constant 0 : index
    %212 = vector.load %arg18[%c0_90, %c0_91, %c0_92] : memref<1x16x64xf32, #tpu.memory_space<vmem>>, vector<1x16x64xf32>
    tpu.vector_store %arg18[%c0_90, %c0_91, %c0_92], %211 {strides = array<i32>} : memref<1x16x64xf32, #tpu.memory_space<vmem>>, vector<1x16x64xf32>,
    return
  }
  func.func @transform_0(%arg0: i32) -> (i32, i32, i32) {
    %c0_i32 = arith.constant 0 : i32
    %c0_i32_0 = arith.constant 0 : i32
    %c0_i32_1 = arith.constant 0 : i32
    return %arg0, %c0_i32, %c0_i32_0 : i32, i32, i32
  }
  func.func @transform_1(%arg0: i32) -> (i32, i32) {
    %c0_i32 = arith.constant 0 : i32
    %c0_i32_0 = arith.constant 0 : i32
    %c0_i32_1 = arith.constant 0 : i32
    return %c0_i32, %c0_i32_0 : i32, i32
  }
  func.func @transform_2(%arg0: i32) -> (i32, i32) {
    %c0_i32 = arith.constant 0 : i32
    %c0_i32_0 = arith.constant 0 : i32
    %c0_i32_1 = arith.constant 0 : i32
    return %c0_i32, %c0_i32_0 : i32, i32
  }
  func.func @transform_3(%arg0: i32) -> (i32, i32) {
    %c0_i32 = arith.constant 0 : i32
    %c0_i32_0 = arith.constant 0 : i32
    %c0_i32_1 = arith.constant 0 : i32
    return %c0_i32, %c0_i32_0 : i32, i32
  }
  func.func @transform_4(%arg0: i32) -> (i32, i32) {
    %c0_i32 = arith.constant 0 : i32
    %c0_i32_0 = arith.constant 0 : i32
    %c0_i32_1 = arith.constant 0 : i32
    return %c0_i32, %c0_i32_0 : i32, i32
  }
  func.func @transform_5(%arg0: i32) -> (i32, i32) {
    %c0_i32 = arith.constant 0 : i32
    %c0_i32_0 = arith.constant 0 : i32
    %c0_i32_1 = arith.constant 0 : i32
    return %c0_i32, %c0_i32_0 : i32, i32
  }
  func.func @transform_6(%arg0: i32) -> (i32, i32) {
    %c0_i32 = arith.constant 0 : i32
    %c0_i32_0 = arith.constant 0 : i32
    %c0_i32_1 = arith.constant 0 : i32
    return %c0_i32, %c0_i32_0 : i32, i32
  }
  func.func @transform_7(%arg0: i32) -> (i32, i32) {
    %c0_i32 = arith.constant 0 : i32
    %c0_i32_0 = arith.constant 0 : i32
    %c0_i32_1 = arith.constant 0 : i32
    return %c0_i32, %c0_i32_0 : i32, i32
  }
  func.func @transform_8(%arg0: i32) -> (i32, i32) {
    %c0_i32 = arith.constant 0 : i32
    %c0_i32_0 = arith.constant 0 : i32
    %c0_i32_1 = arith.constant 0 : i32
    return %c0_i32, %c0_i32_0 : i32, i32
  }
  func.func @transform_9(%arg0: i32) -> (i32, i32) {
    %c0_i32 = arith.constant 0 : i32
    %c0_i32_0 = arith.constant 0 : i32
    %c0_i32_1 = arith.constant 0 : i32
    return %c0_i32, %c0_i32_0 : i32, i32
  }
  func.func @transform_10(%arg0: i32) -> (i32, i32) {
    %c0_i32 = arith.constant 0 : i32
    %c0_i32_0 = arith.constant 0 : i32
    %c0_i32_1 = arith.constant 0 : i32
    return %c0_i32, %c0_i32_0 : i32, i32
  }
  func.func @transform_11(%arg0: i32) -> (i32, i32) {
    %c0_i32 = arith.constant 0 : i32
    %c0_i32_0 = arith.constant 0 : i32
    %c0_i32_1 = arith.constant 0 : i32
    return %c0_i32, %c0_i32_0 : i32, i32
  }
  func.func @transform_12(%arg0: i32) -> (i32, i32) {
    %c0_i32 = arith.constant 0 : i32
    %c0_i32_0 = arith.constant 0 : i32
    %c0_i32_1 = arith.constant 0 : i32
    return %c0_i32, %c0_i32_0 : i32, i32
  }
  func.func @transform_13(%arg0: i32) -> (i32, i32) {
    %c0_i32 = arith.constant 0 : i32
    %c0_i32_0 = arith.constant 0 : i32
    %c0_i32_1 = arith.constant 0 : i32
    return %c0_i32, %c0_i32_0 : i32, i32
  }
  func.func @transform_14(%arg0: i32) -> (i32, i32) {
    %c0_i32 = arith.constant 0 : i32
    %c0_i32_0 = arith.constant 0 : i32
    %c0_i32_1 = arith.constant 0 : i32
    return %c0_i32, %c0_i32_0 : i32, i32
  }
  func.func @transform_15(%arg0: i32) -> (i32, i32) {
    %c0_i32 = arith.constant 0 : i32
    %c0_i32_0 = arith.constant 0 : i32
    %c0_i32_1 = arith.constant 0 : i32
    return %c0_i32, %c0_i32_0 : i32, i32
  }
  func.func @transform_16(%arg0: i32) -> (i32, i32) {
    %c0_i32 = arith.constant 0 : i32
    %c0_i32_0 = arith.constant 0 : i32
    %c0_i32_1 = arith.constant 0 : i32
    return %c0_i32, %c0_i32_0 : i32, i32
  }
  func.func @transform_17(%arg0: i32) -> (i32, i32, i32) {
    %c0_i32 = arith.constant 0 : i32
    %c0_i32_0 = arith.constant 0 : i32
    %c0_i32_1 = arith.constant 0 : i32
    return %arg0, %c0_i32, %c0_i32_0 : i32, i32, i32
  }
}

</mosaic_0001>

<bundles_post_ra>
// kernel: tpu_custom_call.1
= control target key start
LH: loop header
LB: loop body
LE: loop exit
PB: predicated region body
PF: predicated region fallthrough
CT: control target
= control target key end

     0   :  { %s3563_s0 = inlined_call_operand.vmem [shape: f32[2,16,64], index: 0, kind: input, shape index: {}]   ;;  %s3564_s1 = inlined_call_operand.vmem [shape: f32[1,64], index: 1, kind: input, shape index: {}]   ;;  %s3565_s2 = inlined_call_operand.vmem [shape: f32[1,64], index: 2, kind: input, shape index: {}]   ;;  %s3566_s3 = inlined_call_operand.hbm [shape: bf16[64,64], index: 3, kind: input, shape index: {}]   ;;  %s3567_s4 = inlined_call_operand.vmem [shape: f32[1,64], index: 4, kind: input, shape index: {}]   ;;  %s3568_s5 = inlined_call_operand.hbm [shape: bf16[64,64], index: 5, kind: input, shape index: {}]   ;;  %s3569_s6 = inlined_call_operand.vmem [shape: f32[1,64], index: 6, kind: input, shape index: {}]   ;;  %s3570_s7 = inlined_call_operand.hbm [shape: bf16[64,64], index: 7, kind: input, shape index: {}]   ;;  %s3571_s8 = inlined_call_operand.vmem [shape: f32[1,64], index: 8, kind: input, shape index: {}]   ;;  %s3572_s9 = inlined_call_operand.vmem [shape: f32[64,64], index: 9, kind: input, shape index: {}]   ;;  %s3573_s10 = inlined_call_operand.vmem [shape: f32[1,64], index: 10, kind: input, shape index: {}]   ;;  %s3574_s11 = inlined_call_operand.vmem [shape: f32[1,64], index: 11, kind: input, shape index: {}]   ;;  %s3575_s12 = inlined_call_operand.vmem [shape: f32[1,64], index: 12, kind: input, shape index: {}]   ;;  %s3576_s13 = inlined_call_operand.hbm [shape: bf16[64,128], index: 13, kind: input, shape index: {}]   ;;  %s3577_s14 = inlined_call_operand.vmem [shape: f32[1,128], index: 14, kind: input, shape index: {}]   ;;  %s3578_s15 = inlined_call_operand.vmem [shape: bf16[128,64], index: 15, kind: input, shape index: {}]   ;;  %s3579_s16 = inlined_call_operand.vmem [shape: f32[1,64], index: 16, kind: input, shape index: {}]   ;;  %s3580_s17 = inlined_call_operand.hbm [shape: f32[2,16,64], index: 17, kind: output, shape index: {}]  }
   0x1   :  { %3590 = sst [smem:[#allocation22_spill]] %s3563_s0 }
   0x2   :  { %3591 = sst [smem:[#allocation23_spill]] %s3564_s1 }
   0x3   :  { %3592 = sst [smem:[#allocation24_spill]] %s3566_s3 }
   0x4   :  { %3593 = sst [smem:[#allocation25_spill]] %s3568_s5 }
   0x5   :  { %3594 = sst [smem:[#allocation26_spill]] %s3579_s16 }
   0x6   :  { %3595 = sst [smem:[#allocation27_spill]] %s3580_s17 }
   0x7   :  { %22 = vsyncpa [#allocation3], 0 }
   0x8   :  { %23 = vsyncpa [#allocation6], 0 }
   0x9   :  { %24 = vsyncpa [#allocation9], 0 }
   0xa   :  { %25 = vsyncpa [#allocation4], 0 }
   0xb   :  { %27 = vsyncpa [#allocation4 + $0x1], 0  ;;  %s2941_s24 = smov 0   ;;  %s2943_s25 = smov 0  }
   0xc   :  { %s2945_s26 = smov 0   ;;  %s2947_s27 = smov 0  }
   0xd LB: > { %3596 = sst [smem:[#allocation15_spill]] %s2820_s24  ;;  %s2962_s28 = sadd.s32 4294967295, %s2832_s27   ;;  %s2832_s27 = sphi %s2947_s27, %s3625_s27   ;;  %s2828_s26 = sphi %s2945_s26, %s3627_s26   ;;  %s2824_s25 = sphi %s2943_s25, %s3629_s25   ;;  %s2820_s24 = sphi %s2941_s24, %s3628_s24  }
   0xe   : > { %3597 = sst [smem:[#allocation16_spill]] %s2828_s26  ;;  %s2272_s29 = sadd.s32 4294967294, %s2832_s27  }
   0xf   : > { %3598 = sst [smem:[#allocation17_spill]] %s2832_s27  ;;  %s2966_s0 = sadd.s32 1, %s2832_s27  }
  0x10   : > { %3599 = sst [smem:[#allocation18_spill]] %s2966_s0  ;;  %s402_s30 = sadd.s32 1, %s2828_s26 }
  0x11   : > { %s399_s18 = ssub.s32 %s2832_s27, %s2966_s0  ;;  %p412_p0 = scmp.ne.s32.totalorder %s2828_s26, %s2824_s25 }
  0x12   : > { %p400_p1 = scmp.eq.s32.totalorder %s399_s18, 0  ;;  %p413_p2 = scmp.eq.s32.totalorder %s2962_s28, 1 }
  0x13   : > { %p418_p3 = scmp.ne.s32.totalorder %s2824_s25, %s2820_s24  ;;  %p419_p4 = scmp.eq.s32.totalorder %s2272_s29, 1 }
  0x14   : > { %s2977_s19 = scalar_select %p400_p1, %s2828_s26, %s402_s30  }
  0x15   : > { %p2979_p5 = por %p413_p2, %p412_p0  ;;  %p2983_p6 = por %p419_p4, %p418_p3 }
  0x16   : > { %3600 = sst [smem:[#allocation19_spill]] %s2977_s19  ;;  %p2273_p7 = scmp.ge.s32.totalorder %s2832_s27, 1 }
  0x17   : > { %s3601_s1 = scalar_select %p2979_p5, 1, 0 }
  0x18   : > { %s3603_s20 = scalar_select %p2983_p6, 1, 0 }
  0x19   : > { %3602 = sst [smem:[#allocation20_spill]] %s3601_s1  ;;  %p426_p8 = scmp.lt.s32.totalorder %s2832_s27, 3 }
  0x1a   : > { %3604 = sst [smem:[#allocation21_spill]] %s3603_s20  ;;  %p2486_p9 = scmp.eq.s32.totalorder %s2962_s28, 0 }
  0x1b   : > { %p2990_p10 = pnand %p2273_p7, %p426_p8  ;;  %s3606_s5 = sld [smem:[#allocation25_spill]] }
  0x1c   : > { %s3607_s3 = sld [smem:[#allocation24_spill]]  ;;  %s2834_s0 = smov [#allocation5]  }
  0x1d   : > { %p2469_p11 = pneg %p2990_p10  ;;  %s462_s20 = sshll.u32 %s2834_s0, 4  ;;  %s463_s20 = int_to_ptr.vmem [resolvable:$true] %s462_s20 }
  0x1e   : > { %s2835_s22 = smov 64   ;;  %s2836_s23 = smov 4  }
  0x1f   : > { %p3004_p12 = pnand %p2486_p9, %p2469_p11  ;;  %s477_s24 = sshll.u32 %s3570_s7, 4  ;;  %s478_s24 = int_to_ptr.hbm [resolvable:$true] %s477_s24 }
  0x20   : > { %s506_s1 = sshll.u32 %s3576_s13, 4  ;;  %s2838_s17 = smov [#allocation7]   ;;  %s507_s1 = int_to_ptr.hbm [resolvable:$true] %s506_s1 }
  0x21   : > { %s460_s29 = sshll.u32 %s3606_s5, 4  ;;  %s2837_s5 = smov [#allocation2]   ;;  %s461_s29 = int_to_ptr.hbm [resolvable:$true] %s460_s29 }
  0x22   : > { %s443_s19 = sshll.u32 %s3607_s3, 4  ;;  %s445_s30 = sshll.u32 %s2837_s5, 4  ;;  %s444_s19 = int_to_ptr.hbm [resolvable:$true] %s443_s19  ;;  %s446_s30 = int_to_ptr.vmem [resolvable:$true] %s445_s30 }
  0x23   : > { %2475 = dma.hbm_to_vmem [thread:$0]  (!%p3004_p12), %s461_s29, 512, %s463_s20, [#allocation6], %s2835_s22, %s2835_s22, %s2836_s23  }
  0x24   : > { %2472 = dma.hbm_to_vmem [thread:$0]  (!%p3004_p12), %s444_s19, 512, %s446_s30, [#allocation3], %s2835_s22, %s2835_s22, %s2836_s23  }
  0x25   : > { %s479_s16 = sshll.u32 %s2838_s17, 4  ;;  %s2839_s20 = smov [#allocation8]   ;;  %s480_s16 = int_to_ptr.vmem [resolvable:$true] %s479_s16 }
  0x26   : > { %2478 = dma.hbm_to_vmem [thread:$0]  (!%p3004_p12), %s478_s24, 512, %s480_s16, [#allocation6], %s2835_s22, %s2835_s22, %s2836_s23  }
  0x27   : > { %s508_s5 = sshll.u32 %s2839_s20, 4  ;;  %541 = sbr.rel (%p2990_p10) target bundleno = 2167 (0x877), region = 88  ;;  %s509_s5 = int_to_ptr.vmem [resolvable:$true] %s508_s5 }
  0x28   : > { %2481 = dma.hbm_to_vmem [thread:$0]  (!%p3004_p12), %s507_s1, 512, %s509_s5, [#allocation9], %s2835_s22, %s2835_s22, %s2836_s23  }
  0x2c   : > { %2803 = dma.done.wait (%p2486_p9), [#allocation3], 512  }
  0x2d   : > { %2805 = vsyncadd (%p2486_p9), [#allocation3], 4294966784 }
  0x2e   : > { %2807 = dma.done.wait (%p2486_p9), [#allocation6], 1024  }
  0x2f   : > { %2809 = vsyncadd (%p2486_p9), [#allocation6], 4294966272 }
  0x30   : > { %2811 = dma.done.wait (%p2486_p9), [#allocation9], 512  }
  0x31   : > { %2813 = vsyncadd (%p2486_p9), [#allocation9], 4294966784  ;;  %p609_p13 = scmp.lt.s32.totalorder %s2962_s28, 1  ;;  %s3609_s26 = sld [smem:[#allocation22_spill]]  ;;  %vm619_vm0 = vcmask 523264   ;;  %v2840_v4 = vmov 64.0  }
  0x32   : > { %2554 = vrcp.f32 %v2840_v4  ;;  %v2428_v21 = vld [vmem:[#allocation2 + $0x18] sm:$0xff]  ;;  %v2427_v24 = vld [vmem:[#allocation2 + $0x10] sm:$0xff]  ;;  %v2426_v27 = vld [vmem:[#allocation2 + $0x8] sm:$0xff]  ;;  %s3610_s21 = sld [smem:[#allocation23_spill]]  ;;  %vm851_vm8 = vcmask 64512   ;;  %s2841_s20 = smov 112  }
  0x33   : > { %s610_s3 = scalar_select %p609_p13, %s2962_s28, 1  ;;  %v2432_v22 = vld [vmem:[#allocation5 + $0x18] sm:$0xff]  ;;  %725 = vmatpush.bf16.msra.mxu0 %v2428_v21  ;;  %v2431_v25 = vld [vmem:[#allocation5 + $0x10] sm:$0xff]  ;;  %v2430_v28 = vld [vmem:[#allocation5 + $0x8] sm:$0xff]  ;;  %vm1040_vm9 = vcmask 130048  }
  0x34   : > { %v2436_v23 = vld [vmem:[#allocation7 + $0x18] sm:$0xff]  ;;  %777 = vmatpush.bf16.msra.mxu1 %v2432_v22  ;;  %v2435_v26 = vld [vmem:[#allocation7 + $0x10] sm:$0xff]  ;;  %v2434_v29 = vld [vmem:[#allocation7 + $0x8] sm:$0xff]  ;;  %s2842_s5 = smov 120   ;;  %s2845_s17 = smov 80  }
  0x35   : > { %s2424_s16 = sshll.u32 %s610_s3, 4  ;;  %829 = vmatpush.bf16.msra.mxu2 %v2436_v23  ;;  %v2425_v31 = vld [vmem:[#allocation2] sm:$0xff]  ;;  %s2843_s3 = smov 104  }
  0x36   : > { %v2429_v32 = vld [vmem:[#allocation5] sm:$0xff]  ;;  %s2846_s24 = smov 96   ;;  %s606_s0 = sand.u32 1, %s2824_s25  }
  0x37   : > { %s3041_s27 = scalar_lea.vmem %s3609_s26, %s2424_s16  ;;  %726 = vmatpush.bf16.msra.mxu0 %v2427_v24  ;;  %v2433_v34 = vld [vmem:[#allocation7] sm:$0xff]  ;;  %s2844_s16 = smov 88  }
  0x38   : > { %v615_v0 = vld [vmem:[%s3041_s27] sm:$0xff]  ;;  %v616_v2 = vld [vmem:[%s3041_s27 + $0x8] sm:$0xff]  ;;  %v2555_v5 = vpop.eup %2554  ;;  %778 = vmatpush.bf16.msra.mxu1 %v2431_v25  ;;  %s2847_s26 = smov 72   ;;  %s3620_s19 = sld [smem:[#allocation27_spill]] }
  0x39   : > { %v620_v1 = vsel %vm619_vm0, %v615_v0, 0.0  ;;  %v623_v3 = vsel %vm619_vm0, %v616_v2, 0.0  ;;  %v627_v6 = vmul.f32 64.0, %v2555_v5  ;;  %vm631_vm1 = vweird.f32 %v2555_v5  ;;  %830 = vmatpush.bf16.msra.mxu2 %v2435_v26  ;;  %v2544_v52 = vld [vmem:[%s3610_s21] ss:$0 sm:$0xff] }
  0x3a   : > { %621 = vadd.xlane.f32.xlu0 %v620_v1  ;;  %v2545_v57 = vld [vmem:[%s3565_s2] ss:$0 sm:$0xff] }
  0x3b   : > { %v628_v7 = vsub.f32 1.0, %v627_v6  ;;  %727 = vmatpush.bf16.msra.mxu0 %v2426_v27  ;;  %v2547_v1 = vld [vmem:[%s3569_s6] ss:$0 sm:$0xff] }
  0x3c   : > { %779 = vmatpush.bf16.msra.mxu1 %v2430_v28  ;;  %v2548_v24 = vld [vmem:[%s3571_s8] ss:$0 sm:$0xff] }
  0x3d   : > { %v629_v8 = vmul.f32 %v2555_v5, %v628_v7  ;;  %831 = vmatpush.bf16.msra.mxu2 %v2434_v29 }
  0x3f   : > { %v630_v9 = vadd.f32 %v2555_v5, %v629_v8  ;;  %728 = vmatpush.bf16.msra.mxu0 %v2425_v31 }
  0x40   : > { %780 = vmatpush.bf16.msra.mxu1 %v2429_v32 }
  0x41   : > { %v3047_v10 = vsel %vm631_vm1, %v2555_v5, %v630_v9  ;;  %832 = vmatpush.bf16.msra.mxu2 %v2433_v34 }
  0x42   : > { %624 = vadd.xlane.f32.xlu0 %v623_v3 }
  0xad   : > { %v622_v11 = vpop.xlane.xlu0 %621 }
  0xae   : > { %v633_v12 = vmul.f32 %v3047_v10, %v622_v11 }
  0xb0   : > { %v635_v13 = vsub.f32 %v615_v0, %v633_v12  ;;  %v2546_v0 = vld [vmem:[%s3567_s4] ss:$0 sm:$0xff] }
  0xb2   : > { %v637_v14 = vmul.f32 %v635_v13, %v635_v13 }
  0xb4   : > { %v639_v15 = vsel %vm619_vm0, %v637_v14, 0.0 }
  0xb5   : > { %640 = vadd.xlane.f32.xlu1 %v639_v15  ;;  %v625_v16 = vpop.xlane.xlu0 %624 }
  0xb6   : > { %v634_v17 = vmul.f32 %v3047_v10, %v625_v16 }
  0xb8   : > { %v636_v18 = vsub.f32 %v616_v2, %v634_v17 }
  0xba   : > { %v638_v19 = vmul.f32 %v636_v18, %v636_v18 }
  0xbc   : > { %v642_v20 = vsel %vm619_vm0, %v638_v19, 0.0 }
  0xbd   : > { %643 = vadd.xlane.f32.xlu1 %v642_v20 }
 0x128   : > { %v641_v30 = vpop.xlane.xlu1 %640 }
 0x129   : > { %v645_v33 = vmul.f32 %v641_v30, %v3047_v10 }
 0x12b   : > { %v647_v35 = vadd.f32 1e-06, %v645_v33 }
 0x12d   : > { %2556 = vrsqrt.f32 %v647_v35  ;;  %vm655_vm3 = vweird.f32 %v647_v35 }
 0x130   : > { %v644_v36 = vpop.xlane.xlu1 %643 }
 0x131   : > { %v646_v37 = vmul.f32 %v644_v36, %v3047_v10 }
 0x133   : > { %v2557_v38 = vpop.eup %2556  ;;  %v648_v39 = vadd.f32 1e-06, %v646_v37 }
 0x134   : > { %v650_v40 = vmul.f32 %v2557_v38, %v647_v35  ;;  %vm656_vm2 = vweird.f32 %v2557_v38 }
 0x135   : > { %2558 = vrsqrt.f32 %v648_v39  ;;  %vm657_vm4 = vmor %vm655_vm3, %vm656_vm2  ;;  %vm665_vm6 = vweird.f32 %v648_v39 }
 0x136   : > { %v651_v41 = vmul.f32 %v2557_v38, %v650_v40 }
 0x138   : > { %v652_v42 = vmul.f32 0.5, %v651_v41 }
 0x13a   : > { %v653_v43 = vsub.f32 1.5, %v652_v42 }
 0x13b   : > { %v2559_v44 = vpop.eup %2558 }
 0x13c   : > { %v654_v45 = vmul.f32 %v2557_v38, %v653_v43  ;;  %v660_v46 = vmul.f32 %v2559_v44, %v648_v39  ;;  %vm666_vm5 = vweird.f32 %v2559_v44 }
 0x13d   : > { %vm667_vm7 = vmor %vm665_vm6, %vm666_vm5 }
 0x13e   : > { %v661_v47 = vmul.f32 %v2559_v44, %v660_v46  ;;  %v658_v48 = vsel %vm657_vm4, %v2557_v38, %v654_v45 }
 0x13f   : > { %v669_v51 = vmul.f32 %v658_v48, %v635_v13 }
 0x140   : > { %v662_v49 = vmul.f32 0.5, %v661_v47 }
 0x141   : > { %v674_v56 = vmul.f32 %v2544_v52, %v669_v51 }
 0x142   : > { %v663_v50 = vsub.f32 1.5, %v662_v49 }
 0x143   : > { %v679_v59 = vadd.f32 %v2545_v57, %v674_v56 }
 0x144   : > { %v664_v53 = vmul.f32 %v2559_v44, %v663_v50 }
 0x146   : > { %v668_v54 = vsel %vm667_vm7, %v2559_v44, %v664_v53 }
 0x147   : > { %v670_v55 = vmul.f32 %v668_v54, %v636_v18 }
 0x149   : > { %v675_v58 = vmul.f32 %v2544_v52, %v670_v55 }
 0x14b   : > { %v680_v60 = vadd.f32 %v2545_v57, %v675_v58 }
 0x14d   : > { %v681_v61 = vpack.c.bf16 %v680_v60, %v679_v59 }
 0x14f   : > { %2303 = vmatmul.msk.bf16.vlgmr.msra.gmra.mxu0 %vm619_vm0, %v681_v61  ;;  %2320 = vmatmul.msk.bf16.vlgmr.msra.gmra.mxu1 %vm619_vm0, %v681_v61 }
 0x150   : > { %2337 = vmatmul.msk.bf16.vlgmr.msra.gmra.mxu2 %vm619_vm0, %v681_v61 }
 0x1cc   : > { %v730_v62 = vpop.f32.mrf.mxu0  ;;  %v782_v63 = vpop.f32.mrf.mxu1 }
 0x1cd   : > { %v731_v2 = vadd.f32 %v2546_v0, %v730_v62  ;;  %v783_v3 = vadd.f32 %v2547_v1, %v782_v63 }
 0x1cf   : > { %v735_v6 = vpack.c.bf16 %v731_v2, %v731_v2  ;;  %v787_v7 = vpack.c.bf16 %v783_v3, %v783_v3 }
 0x1d1   : > { %v843_v13 = vunpack.c.l.b16 %v735_v6  ;;  %v848_v14 = vunpack.c.l.b16 %v787_v7 }
 0x1d3   : > { %v834_v20 = vpop.f32.mrf.mxu2 }
 0x1d4   : > { %v732_v4 = vpop.f32.mrf.mxu0  ;;  %v784_v5 = vpop.f32.mrf.mxu1  ;;  %v835_v26 = vadd.f32 %v2548_v24, %v834_v20 }
 0x1d5   : > { %v733_v8 = vadd.f32 %v2546_v0, %v732_v4  ;;  %v785_v9 = vadd.f32 %v2547_v1, %v784_v5 }
 0x1d6   : > { %v839_v29 = vpack.c.bf16 %v835_v26, %v835_v26 }
 0x1d7   : > { %v736_v11 = vpack.c.bf16 %v733_v8, %v733_v8  ;;  %v788_v12 = vpack.c.bf16 %v785_v9, %v785_v9 }
 0x1d8   : > { %v1456_v31 = vunpack.c.l.b16 %v839_v29 }
 0x1d9   : > { %v844_v15 = vunpack.c.l.b16 %v736_v11  ;;  %v849_v16 = vunpack.c.l.b16 %v788_v12 }
 0x1db   : > { %v845_v17 = vpack.c.b16 %v844_v15, %v843_v13  ;;  %v850_v18 = vpack.c.b16 %v849_v16, %v848_v14  ;;  %v836_v23 = vpop.f32.mrf.mxu2 }
 0x1dc   : > { %v837_v25 = vadd.f32 %v2548_v24, %v836_v23 }
 0x1dd   : > { %898 = vrot.lane.b32.xlu0 %v850_v18, %s2841_s20  ;;  %874 = vrot.lane.b32.xlu2 %v850_v18, %s2842_s5  ;;  %v856_v19 = vsel %vm851_vm8, %v850_v18, 0 }
 0x1de   : > { %896 = vrot.lane.b32.xlu1 %v845_v17, %s2841_s20  ;;  %865 = vmatpush.bf16.xpose.msrb.mxu0 %v856_v19  ;;  %v840_v28 = vpack.c.bf16 %v837_v25, %v837_v25 }
 0x1e0   : > { %v1457_v30 = vunpack.c.l.b16 %v840_v28 }
 0x1e2   : > { %v3091_v33 = vpack.c.b16 %v1457_v30, %v1456_v31 }
 0x1e5   : > { %920 = vrot.lane.b32.xlu0 %v845_v17, %s2843_s3  ;;  %872 = vrot.lane.b32.xlu2 %v845_v17, %s2842_s5 }
 0x1e6   : > { %968 = vrot.lane.b32.xlu1 %v845_v17, %s2844_s16  ;;  %2338 = vmatmul.msk.bf16.vlgmr.msrb.gmra.mxu0 %vm851_vm8, %v845_v17 }
 0x1ed   : > { %994 = vrot.lane.b32.xlu0 %v850_v18, %s2845_s17  ;;  %946 = vrot.lane.b32.xlu2 %v850_v18, %s2846_s24 }
 0x1ee   : > { %1018 = vrot.lane.b32.xlu1 %v850_v18, %s2847_s26 }
 0x1f5   : > { %1016 = vrot.lane.b32.xlu0 %v845_v17, %s2847_s26  ;;  %922 = vrot.lane.b32.xlu2 %v850_v18, %s2843_s3 }
 0x1fd   : > { %944 = vrot.lane.b32.xlu2 %v845_v17, %s2846_s24 }
 0x205   : > { %970 = vrot.lane.b32.xlu2 %v850_v18, %s2844_s16 }
 0x20d   : > { %992 = vrot.lane.b32.xlu2 %v845_v17, %s2845_s17 }
 0x237   : > { %v875_v21 = vpop.permute.xlu2 %874 }
 0x238   : > { %v880_v22 = vsel %vm851_vm8, %v875_v21, 0 }
 0x239   : > { %889 = vmatpush.bf16.xpose.msra.mxu3 %v880_v22 }
 0x23f   : > { %v873_v27 = vpop.permute.xlu2 %872 }
 0x240   : > { %2339 = vmatmul.msk.bf16.vlgmr.msra.gmra.mxu3 %vm851_vm8, %v873_v27 }
 0x247   : > { %v947_v32 = vpop.permute.xlu2 %946 }
 0x248   : > { %v952_v34 = vsel %vm851_vm8, %v947_v32, 0 }
 0x249   : > { %961 = vmatpush.bf16.xpose.msrb.mxu2 %v952_v34 }
 0x24f   : > { %v899_v35 = vpop.permute.xlu0 %898  ;;  %v923_v36 = vpop.permute.xlu2 %922 }
 0x250   : > { %v904_v37 = vsel %vm851_vm8, %v899_v35, 0  ;;  %v897_v38 = vpop.permute.xlu1 %896  ;;  %v928_v39 = vsel %vm851_vm8, %v923_v36, 0 }
 0x251   : > { %1470 = vmatpush.bf16.msra.mxu2 %v3091_v33  ;;  %913 = vmatpush.bf16.xpose.msra.mxu0 %v904_v37 }
 0x252   : > { %937 = vmatpush.bf16.xpose.msrb.mxu1 %v928_v39 }
 0x257   : > { %v921_v40 = vpop.permute.xlu0 %920  ;;  %v945_v41 = vpop.permute.xlu2 %944 }
 0x258   : > { %v969_v42 = vpop.permute.xlu1 %968  ;;  %2340 = vmatmul.msk.bf16.vlgmr.msra.gmra.mxu0 %vm851_vm8, %v897_v38  ;;  %2342 = vmatmul.msk.bf16.vlgmr.msrb.gmra.mxu2 %vm851_vm8, %v945_v41 }
 0x259   : > { %2341 = vmatmul.msk.bf16.vlgmr.msrb.gmra.mxu1 %vm851_vm8, %v921_v40 }
 0x25f   : > { %v995_v43 = vpop.permute.xlu0 %994  ;;  %v971_v44 = vpop.permute.xlu2 %970 }
 0x260   : > { %v1000_v45 = vsel %vm851_vm8, %v995_v43, 0  ;;  %v1019_v46 = vpop.permute.xlu1 %1018  ;;  %v976_v47 = vsel %vm851_vm8, %v971_v44, 0 }
 0x261   : > { %v1024_v48 = vsel %vm851_vm8, %v1019_v46, 0  ;;  %985 = vmatpush.bf16.xpose.msrb.mxu3 %v976_v47  ;;  %1009 = vmatpush.bf16.xpose.msrb.mxu0 %v1000_v45 }
 0x262   : > { %1033 = vmatpush.bf16.xpose.msra.mxu1 %v1024_v48 }
 0x263   : > { %v867_v60 = vpop.f32.mrf.mxu0 }
 0x264   : > { %v1041_v5 = vsel %vm1040_vm9, %v867_v60, -inf }
 0x267   : > { %v1017_v49 = vpop.permute.xlu0 %1016  ;;  %v993_v50 = vpop.permute.xlu2 %992 }
 0x268   : > { %2343 = vmatmul.msk.bf16.vlgmr.msrb.gmra.mxu3 %vm851_vm8, %v969_v42  ;;  %2344 = vmatmul.msk.bf16.vlgmr.msrb.gmra.mxu0 %vm851_vm8, %v993_v50 }
 0x269   : > { %2345 = vmatmul.msk.bf16.vlgmr.msra.gmra.mxu1 %vm851_vm8, %v1017_v49 }
 0x26b   : > { %v3118_v2 = vpop.f32.mrf.mxu0 }
 0x26c   : > { %v1044_v7 = vsel %vm1040_vm9, %v3118_v2, -inf }
 0x2c3   : > { %v891_v51 = vpop.f32.mrf.mxu3 }
 0x2c4   : > { %v1047_v52 = vsel %vm1040_vm9, %v891_v51, -inf }
 0x2c5   : > { %1048 = vmax.xlane.f32.xlu2 %v1047_v52 }
 0x2cb   : > { %v893_v53 = vpop.f32.mrf.mxu3 }
 0x2cc   : > { %v1050_v54 = vsel %vm1040_vm9, %v893_v53, -inf }
 0x2cd   : > { %1051 = vmax.xlane.f32.xlu1 %v1050_v54 }
 0x2d5   : > { %v3125_v6 = vpop.f32.mrf.mxu0 }
 0x2d6   : > { %v1053_v8 = vsel %vm1040_vm9, %v3125_v6, -inf  ;;  %v3131_v9 = vpop.f32.mrf.mxu1 }
 0x2d7   : > { %v1059_v13 = vsel %vm1040_vm9, %v3131_v9, -inf }
 0x2db   : > { %v3110_v55 = vpop.f32.mrf.mxu2 }
 0x2dc   : > { %v1065_v56 = vsel %vm1040_vm9, %v3110_v55, -inf }
 0x2dd   : > { %v3133_v12 = vpop.f32.mrf.mxu0 }
 0x2de   : > { %v1056_v14 = vsel %vm1040_vm9, %v3133_v12, -inf  ;;  %v3141_v16 = vpop.f32.mrf.mxu1 }
 0x2df   : > { %v1062_v19 = vsel %vm1040_vm9, %v3141_v16, -inf }
 0x2e3   : > { %v3143_v17 = vpop.f32.mrf.mxu2 }
 0x2e4   : > { %v1068_v18 = vsel %vm1040_vm9, %v3143_v17, -inf }
 0x2e5   : > { %v3149_v20 = vpop.f32.mrf.mxu0 }
 0x2e6   : > { %1482 = vrot.lane.b32.xlu1 %v3091_v33, %s2842_s5  ;;  %v1077_v25 = vsel %vm1040_vm9, %v3149_v20, -inf  ;;  %s2778_s5 = scalar_lea.hbm %s3620_s19, 32 }
 0x2eb   : > { %v3139_v15 = vpop.f32.mrf.mxu3 }
 0x2ec   : > { %v1071_v23 = vsel %vm1040_vm9, %v3139_v15, -inf }
 0x2ed   : > { %v3157_v24 = vpop.f32.mrf.mxu0 }
 0x2ee   : > { %v1080_v26 = vsel %vm1040_vm9, %v3157_v24, -inf }
 0x2f3   : > { %v3151_v21 = vpop.f32.mrf.mxu3 }
 0x2f4   : > { %v1074_v22 = vsel %vm1040_vm9, %v3151_v21, -inf }
 0x310   : > { %1066 = vmax.xlane.f32.xlu1 %v1065_v56 }
 0x338   : > { %v1049_v57 = vpop.xlane.xlu2 %1048 }
 0x339   : > { %v1091_v58 = vsub.f32 %v891_v51, %v1049_v57 }
 0x33b   : > { %v1109_v59 = vmul.f32 1.442695, %v1091_v58 }
 0x33d   : > { %2560 = vpow2.f32 %v1109_v59  ;;  %v3170_v59 = vpop.f32.mrf.mxu1 }
 0x340   : > { %v1052_v61 = vpop.xlane.xlu1 %1051 }
 0x341   : > { %v1092_v62 = vsub.f32 %v893_v53, %v1052_v61 }
 0x343   : > { %v3114_v63 = vpop.eup %2560  ;;  %v1111_v0 = vmul.f32 1.442695, %v1092_v62 }
 0x344   : > { %v1143_v1 = vsel %vm1040_vm9, %v3114_v63, 0.0 }
 0x345   : > { %2562 = vpow2.f32 %v1111_v0  ;;  %1144 = vadd.xlane.f32.xlu0 %v1143_v1 }
 0x34b   : > { %v3120_v3 = vpop.eup %2562 }
 0x34c   : > { %v1146_v4 = vsel %vm1040_vm9, %v3120_v3, 0.0 }
 0x34d   : > { %1147 = vadd.xlane.f32.xlu2 %v1146_v4  ;;  %1042 = vmax.xlane.f32.xlu0 %v1041_v5 }
 0x355   : > { %1045 = vmax.xlane.f32.xlu2 %v1044_v7  ;;  %1054 = vmax.xlane.f32.xlu0 %v1053_v8 }
 0x358   : > { %v1483_v11 = vpop.permute.xlu1 %1482 }
 0x359   : > { %1495 = vmatpush.bf16.msra.mxu3 %v1483_v11 }
 0x35d   : > { %1060 = vmax.xlane.f32.xlu0 %v1059_v13  ;;  %1057 = vmax.xlane.f32.xlu2 %v1056_v14  ;;  %v1083_v14 = vsel %vm1040_vm9, %v3170_v59, -inf }
 0x365   : > { %1069 = vmax.xlane.f32.xlu0 %v1068_v18  ;;  %1063 = vmax.xlane.f32.xlu2 %v1062_v19 }
 0x36d   : > { %1075 = vmax.xlane.f32.xlu0 %v1074_v22  ;;  %1072 = vmax.xlane.f32.xlu2 %v1071_v23 }
 0x375   : > { %1078 = vmax.xlane.f32.xlu2 %v1077_v25  ;;  %1081 = vmax.xlane.f32.xlu0 %v1080_v26  ;;  %v3181_v26 = vpop.f32.mrf.mxu1 }
 0x383   : > { %v1067_v19 = vpop.xlane.xlu1 %1066 }
 0x3b8   : > { %v1145_v27 = vpop.xlane.xlu0 %1144 }
 0x3b9   : > { %2564 = vrcp.f32 %v1145_v27  ;;  %v1226_v37 = vand.u32 2147483648, %v1145_v27  ;;  %vm1220_vm11 = vweird.f32 %v1145_v27  ;;  %v1224_v39 = vand.u32 2147483647, %v1145_v27 }
 0x3bb   : > { %v1227_v45 = vor.u32 1.1754944e-38, %v1226_v37  ;;  %vm1225_vm13 = vcmp.eq.f32.partialorder %v1224_v39, 8.507059e+37 }
 0x3bf   : > { %v2565_v28 = vpop.eup %2564 }
 0x3c0   : > { %v1216_v29 = vmul.f32 %v2565_v28, %v1145_v27  ;;  %v1148_v30 = vpop.xlane.xlu2 %1147  ;;  %v1043_v31 = vpop.xlane.xlu0 %1042  ;;  %vm1221_vm10 = vweird.f32 %v2565_v28 }
 0x3c1   : > { %2566 = vrcp.f32 %v1148_v30  ;;  %v1089_v34 = vsub.f32 %v867_v60, %v1043_v31  ;;  %vm1222_vm12 = vmor %vm1220_vm11, %vm1221_vm10  ;;  %v1241_v49 = vand.u32 2147483648, %v1148_v30  ;;  %v1239_v53 = vand.u32 2147483647, %v1148_v30 }
 0x3c2   : > { %v1217_v32 = vsub.f32 1.0, %v1216_v29  ;;  %vm1235_vm15 = vweird.f32 %v1148_v30 }
 0x3c3   : > { %v1105_v36 = vmul.f32 1.442695, %v1089_v34  ;;  %v1242_v60 = vor.u32 1.1754944e-38, %v1241_v49  ;;  %vm1240_vm2 = vcmp.eq.f32.partialorder %v1239_v53, 8.507059e+37 }
 0x3c4   : > { %v1218_v35 = vmul.f32 %v2565_v28, %v1217_v32 }
 0x3c5   : > { %2568 = vpow2.f32 %v1105_v36 }
 0x3c6   : > { %v1219_v38 = vadd.f32 %v2565_v28, %v1218_v35  ;;  %v1086_v35 = vsel %vm1040_vm9, %v3181_v26, -inf }
 0x3c7   : > { %v2567_v40 = vpop.eup %2566 }
 0x3c8   : > { %v1223_v41 = vsel %vm1222_vm12, %v2565_v28, %v1219_v38  ;;  %v1231_v42 = vmul.f32 %v2567_v40, %v1148_v30  ;;  %v1046_v43 = vpop.xlane.xlu2 %1045  ;;  %v1055_v44 = vpop.xlane.xlu0 %1054  ;;  %vm1236_vm14 = vweird.f32 %v2567_v40  ;;  %v1097_v30 = vsub.f32 %v3110_v55, %v1067_v19 }
 0x3c9   : > { %v1090_v46 = vsub.f32 %v3118_v2, %v1046_v43  ;;  %v1228_v48 = vsel %vm1225_vm13, %v1227_v45, %v1223_v41  ;;  %v1093_v54 = vsub.f32 %v3125_v6, %v1055_v44  ;;  %vm1237_vm1 = vmor %vm1235_vm15, %vm1236_vm14 }
 0x3ca   : > { %v1232_v47 = vsub.f32 1.0, %v1231_v42  ;;  %v1229_v57 = vmul.f32 %v3114_v63, %v1228_v48 }
 0x3cb   : > { %v1107_v50 = vmul.f32 1.442695, %v1090_v46  ;;  %v3164_v51 = vpop.eup %2568  ;;  %v1113_v62 = vmul.f32 1.442695, %v1093_v54 }
 0x3cc   : > { %v1233_v52 = vmul.f32 %v2567_v40, %v1232_v47  ;;  %v1137_v56 = vsel %vm1040_vm9, %v3164_v51, 0.0  ;;  %v1427_v5 = vpack.c.bf16 %v1229_v57, %v1229_v57 }
 0x3cd   : > { %2570 = vpow2.f32 %v1107_v50  ;;  %1138 = vadd.xlane.f32.xlu2 %v1137_v56 }
 0x3ce   : > { %v1234_v58 = vadd.f32 %v2567_v40, %v1233_v52  ;;  %2572 = vpow2.f32 %v1113_v62  ;;  %v1479_v18 = vunpack.c.l.b16 %v1427_v5 }
 0x3d0   : > { %v1238_v61 = vsel %vm1237_vm1, %v2567_v40, %v1234_v58  ;;  %v1061_v0 = vpop.xlane.xlu0 %1060  ;;  %v1058_v1 = vpop.xlane.xlu2 %1057 }
 0x3d1   : > { %v1243_v2 = vsel %vm1240_vm2, %v1242_v60, %v1238_v61  ;;  %v1095_v4 = vsub.f32 %v3131_v9, %v1061_v0  ;;  %v1094_v8 = vsub.f32 %v3133_v12, %v1058_v1  ;;  %v1442_v61 = vld [vmem:[%s3572_s9 + $0x8] sm:$0xff] }
 0x3d2   : > { %v1244_v6 = vmul.f32 %v3120_v3, %v1243_v2  ;;  %1523 = vmatpush.msra.mxu0 %v1442_v61  ;;  %2450 = vmatpush.msrb.mxu1 %v1442_v61 }
 0x3d3   : > { %v3174_v7 = vpop.eup %2570  ;;  %v1117_v63 = vmul.f32 1.442695, %v1095_v4  ;;  %v1115_v3 = vmul.f32 1.442695, %v1094_v8 }
 0x3d4   : > { %v1428_v11 = vpack.c.bf16 %v1244_v6, %v1244_v6  ;;  %v1140_v13 = vsel %vm1040_vm9, %v3174_v7, 0.0  ;;  %v3185_v28 = vpop.eup %2572 }
 0x3d5   : > { %2574 = vpow2.f32 %v1117_v63  ;;  %1141 = vadd.xlane.f32.xlu0 %v1140_v13  ;;  %1084 = vmax.xlane.f32.xlu2 %v1083_v14 }
 0x3d6   : > { %v1480_v9 = vunpack.c.l.b16 %v1428_v11  ;;  %2576 = vpow2.f32 %v1115_v3 }
 0x3d8   : > { %v1070_v22 = vpop.xlane.xlu0 %1069  ;;  %v1064_v23 = vpop.xlane.xlu2 %1063  ;;  %v1481_v25 = vpack.c.b16 %v1480_v9, %v1479_v18 }
 0x3d9   : > { %v1098_v12 = vsub.f32 %v3143_v17, %v1070_v22  ;;  %v1096_v27 = vsub.f32 %v3141_v16, %v1064_v23  ;;  %v1149_v16 = vsel %vm1040_vm9, %v3185_v28, 0.0  ;;  %v1121_v17 = vmul.f32 1.442695, %v1097_v30 }
 0x3da   : > { %2347 = vmatmul.msk.bf16.vlgmr.msra.gmra.mxu3 %vm1040_vm9, %v1481_v25 }
 0x3db   : > { %v3188_v29 = vpop.eup %2574  ;;  %v1123_v31 = vmul.f32 1.442695, %v1098_v12  ;;  %v1119_v32 = vmul.f32 1.442695, %v1096_v27 }
 0x3dc   : > { %v1155_v34 = vsel %vm1040_vm9, %v3188_v29, 0.0  ;;  %v3197_v55 = vpop.eup %2576 }
 0x3dd   : > { %2578 = vpow2.f32 %v1123_v31  ;;  %1156 = vadd.xlane.f32.xlu1 %v1155_v34  ;;  %1087 = vmax.xlane.f32.xlu0 %v1086_v35  ;;  %v1152_v40 = vsel %vm1040_vm9, %v3197_v55, 0.0 }
 0x3de   : > { %2580 = vpow2.f32 %v1119_v32  ;;  %1150 = vadd.xlane.f32.xlu2 %v1149_v16 }
 0x3df   : > { %2582 = vpow2.f32 %v1121_v17 }
 0x3e0   : > { %v1073_v36 = vpop.xlane.xlu2 %1072 }
 0x3e1   : > { %v1099_v45 = vsub.f32 %v3139_v15, %v1073_v36  ;;  %v3227_v15 = vpop.xlane.xlu0 %1075 }
 0x3e3   : > { %v3199_v37 = vpop.eup %2578  ;;  %v1125_v48 = vmul.f32 1.442695, %v1099_v45 }
 0x3e4   : > { %v3201_v38 = vpop.eup %2580  ;;  %v1164_v39 = vsel %vm1040_vm9, %v3199_v37, 0.0 }
 0x3e5   : > { %1165 = vadd.xlane.f32.xlu1 %v1164_v39  ;;  %v1158_v41 = vsel %vm1040_vm9, %v3201_v38, 0.0  ;;  %1153 = vadd.xlane.f32.xlu0 %v1152_v40  ;;  %v3209_v43 = vpop.eup %2582 }
 0x3e6   : > { %1159 = vadd.xlane.f32.xlu2 %v1158_v41  ;;  %v1161_v47 = vsel %vm1040_vm9, %v3209_v43, 0.0 }
 0x3e8   : > { %v1079_v42 = vpop.xlane.xlu2 %1078 }
 0x3e9   : > { %v1101_v44 = vsub.f32 %v3149_v20, %v1079_v42  ;;  %v1082_v53 = vpop.xlane.xlu0 %1081 }
 0x3ea   : > { %v1102_v54 = vsub.f32 %v3157_v24, %v1082_v53 }
 0x3eb   : > { %v1129_v46 = vmul.f32 1.442695, %v1101_v44 }
 0x3ec   : > { %v1131_v56 = vmul.f32 1.442695, %v1102_v54 }
 0x3ed   : > { %2584 = vpow2.f32 %v1129_v46  ;;  %1162 = vadd.xlane.f32.xlu0 %v1161_v47  ;;  %v1100_v47 = vsub.f32 %v3151_v21, %v3227_v15 }
 0x3ee   : > { %2586 = vpow2.f32 %v1125_v48 }
 0x3ef   : > { %2588 = vpow2.f32 %v1131_v56  ;;  %v1127_v54 = vmul.f32 1.442695, %v1100_v47 }
 0x3f3   : > { %v3215_v49 = vpop.eup %2584 }
 0x3f4   : > { %v1173_v50 = vsel %vm1040_vm9, %v3215_v49, 0.0  ;;  %v3219_v52 = vpop.eup %2586 }
 0x3f5   : > { %1174 = vadd.xlane.f32.xlu0 %v1173_v50  ;;  %v1167_v20 = vsel %vm1040_vm9, %v3219_v52, 0.0  ;;  %v3232_v57 = vpop.eup %2588 }
 0x3f6   : > { %v1176_v58 = vsel %vm1040_vm9, %v3232_v57, 0.0 }
 0x3fd   : > { %1168 = vadd.xlane.f32.xlu0 %v1167_v20 }
 0x3fe   : > { %1565 = vrot.lane.b32.xlu2 %v3091_v33, %s2841_s20  ;;  %1677 = vrot.lane.b32.xlu1 %v3091_v33, %s2846_s24 }
 0x411   : > { %1621 = vrot.lane.b32.xlu0 %v3091_v33, %s2843_s3  ;;  %s3619_s3 = sld [smem:[#allocation26_spill]] }
 0x428   : > { %1177 = vadd.xlane.f32.xlu1 %v1176_v58 }
 0x440   : > { %v1139_v60 = vpop.xlane.xlu2 %1138 }
 0x441   : > { %1733 = vrot.lane.b32.xlu1 %v3091_v33, %s2844_s16  ;;  %2590 = vrcp.f32 %v1139_v60  ;;  %v1196_v19 = vand.u32 2147483648, %v1139_v60  ;;  %vm1190_vm5 = vweird.f32 %v1139_v60  ;;  %v1194_v12 = vand.u32 2147483647, %v1139_v60  ;;  %s2284_s16 = sshll.u32 %s606_s0, 4 }
 0x442   : > { %s608_s29 = scalar_lea.vmem [#allocation10], %s2284_s16 }
 0x443   : > { %vm1195_vm12 = vcmp.eq.f32.partialorder %v1194_v12, 8.507059e+37 }
 0x447   : > { %v2591_v24 = vpop.eup %2590 }
 0x448   : > { %v1142_v62 = vpop.xlane.xlu0 %1141  ;;  %v1186_v0 = vmul.f32 %v2591_v24, %v1139_v60  ;;  %v1085_v1 = vpop.xlane.xlu2 %1084  ;;  %vm1191_vm3 = vweird.f32 %v2591_v24 }
 0x449   : > { %2592 = vrcp.f32 %v1142_v62  ;;  %1789 = vrot.lane.b32.xlu1 %v3091_v33, %s2845_s17  ;;  %v1103_v2 = vsub.f32 %v3170_v59, %v1085_v1  ;;  %v1211_v3 = vand.u32 2147483648, %v1142_v62  ;;  %v1209_v23 = vand.u32 2147483647, %v1142_v62  ;;  %vm3254_vm6 = vmor %vm1190_vm5, %vm1191_vm3  ;;  %s2449_s17 = sshll.u32 %s2962_s28, 4  ;;  %s2154_s28 = scalar_lea.sflag [#allocation4], %s606_s0 }
 0x44a   : > { %v1187_v4 = vsub.f32 1.0, %v1186_v0  ;;  %vm1205_vm7 = vweird.f32 %v1142_v62  ;;  %s2165_s1 = scalar_lea.hbm %s3620_s19, %s2449_s17 }
 0x44b   : > { %v1133_v5 = vmul.f32 1.442695, %v1103_v2  ;;  %v1212_v35 = vor.u32 1.1754944e-38, %v1211_v3  ;;  %vm1210_vm11 = vcmp.eq.f32.partialorder %v1209_v23, 8.507059e+37  ;;  %s2168_s22 = sshll.u32 %s2165_s1, 4  ;;  %s2169_s22 = int_to_ptr.hbm [resolvable:$true] %s2168_s22 }
 0x44c   : > { %v1188_v63 = vmul.f32 %v2591_v24, %v1187_v4  ;;  %s2772_s23 = sshra.s32 %s2169_s22, 4  ;;  %s2773_s23 = int_to_ptr.hbm [resolvable:$true] %s2772_s23 }
 0x44d   : > { %2594 = vpow2.f32 %v1133_v5  ;;  %s2774_s30 = scalar_lea.hbm %s2773_s23, 16  ;;  %p2779_p3 = scmp.lt.s32.totalorder %s2773_s23, %s3620_s19 }
 0x44e   : > { %v1189_v9 = vadd.f32 %v2591_v24, %v1188_v63  ;;  %p2775_p0 = scmp.ne.s32.totalorder %s2773_s23, %s2774_s30  ;;  %p2780_p4 = scmp.lt.s32.totalorder %s2778_s5, %s2774_s30 }
 0x44f   : > { %v2593_v6 = vpop.eup %2592 }
 0x450   : > { %v1201_v8 = vmul.f32 %v2593_v6, %v1142_v62  ;;  %v1088_v11 = vpop.xlane.xlu0 %1087  ;;  %v3244_v13 = vpop.xlane.xlu1 %1156  ;;  %vm1206_vm4 = vweird.f32 %v2593_v6  ;;  %v1193_v34 = vsel %vm3254_vm6, %v2591_v24, %v1189_v9  ;;  %p2776_p1 = pnand %p2775_p0, %p2979_p5  ;;  %p2781_p7 = por %p2780_p4, %p2779_p3 }
 0x451   : > { %v3246_v14 = vpop.xlane.xlu2 %1150  ;;  %v1104_v25 = vsub.f32 %v3181_v26, %v1088_v11  ;;  %vm1207_vm10 = vmor %vm1205_vm7, %vm1206_vm4  ;;  %v1197_v26 = vor.u32 1.1754944e-38, %v1196_v19  ;;  %vm1280_vm6 = vweird.f32 %v3244_v13 }
 0x452   : > { %v1202_v18 = vsub.f32 1.0, %v1201_v8  ;;  %2596 = vrcp.f32 %v3246_v14  ;;  %v1254_v24 = vand.u32 2147483647, %v3246_v14  ;;  %v1256_v62 = vand.u32 2147483648, %v3246_v14  ;;  %p2777_p2 = pneg %p2776_p1 }
 0x453   : > { %v3249_v22 = vpop.eup %2594  ;;  %v1135_v32 = vmul.f32 1.442695, %v1104_v25  ;;  %v1198_v42 = vsel %vm1195_vm12, %v1197_v26, %v1193_v34  ;;  %vm1250_vm14 = vweird.f32 %v3246_v14 }
 0x454   : > { %v1203_v59 = vmul.f32 %v2593_v6, %v1202_v18  ;;  %v1179_v27 = vsel %vm1040_vm9, %v3249_v22, 0.0  ;;  %v1199_v48 = vmul.f32 %v3164_v51, %v1198_v42  ;;  %vm1255_vm1 = vcmp.eq.f32.partialorder %v1254_v24, 8.507059e+37  ;;  %p2782_p8 = pnand %p2781_p7, %p2777_p2 }
 0x455   : > { %1180 = vadd.xlane.f32.xlu2 %v1179_v27  ;;  %2598 = vpow2.f32 %v1135_v32  ;;  %v1257_v18 = vor.u32 1.1754944e-38, %v1256_v62 }
 0x456   : > { %v1204_v31 = vadd.f32 %v2593_v6, %v1203_v59  ;;  %v1425_v51 = vpack.c.bf16 %v1199_v48, %v1199_v48 }
 0x458   : > { %v2597_v16 = vpop.eup %2596  ;;  %v1208_v17 = vsel %vm1207_vm10, %v2593_v6, %v1204_v31  ;;  %v3260_v36 = vpop.xlane.xlu0 %1153  ;;  %v1451_v6 = vunpack.c.l.b16 %v1425_v51 }
 0x459   : > { %v1213_v39 = vsel %vm1210_vm11, %v1212_v35, %v1208_v17  ;;  %v1246_v40 = vmul.f32 %v2597_v16, %v3246_v14  ;;  %v3263_v41 = vpop.xlane.xlu2 %1159  ;;  %v3266_v46 = vpop.xlane.xlu1 %1165  ;;  %vm1251_vm13 = vweird.f32 %v2597_v16  ;;  %v1271_v3 = vand.u32 2147483648, %v3260_v36 }
 0x45a   : > { %v1214_v44 = vmul.f32 %v3174_v7, %v1213_v39  ;;  %2600 = vrcp.f32 %v3263_v41  ;;  %vm1252_vm15 = vmor %vm1250_vm14, %vm1251_vm13  ;;  %v1269_v12 = vand.u32 2147483647, %v3260_v36  ;;  %vm1265_vm3 = vweird.f32 %v3260_v36 }
 0x45b   : > { %v1247_v45 = vsub.f32 1.0, %v1246_v40  ;;  %2602 = vrcp.f32 %v3244_v13  ;;  %v3274_v53 = vpop.eup %2598  ;;  %v1272_v17 = vor.u32 1.1754944e-38, %v1271_v3  ;;  %vm1295_vm11 = vweird.f32 %v3263_v41 }
 0x45c   : > { %2604 = vrcp.f32 %v3260_v36  ;;  %v1426_v7 = vpack.c.bf16 %v1214_v44, %v1214_v44  ;;  %v1182_v56 = vsel %vm1040_vm9, %v3274_v53, 0.0  ;;  %vm1270_vm5 = vcmp.eq.f32.partialorder %v1269_v12, 8.507059e+37 }
 0x45d   : > { %v1248_v50 = vmul.f32 %v2597_v16, %v1247_v45  ;;  %v1497_v20 = vpop.f32.mrf.mxu3  ;;  %2606 = vrcp.f32 %v3266_v46  ;;  %1183 = vadd.xlane.f32.xlu0 %v1182_v56  ;;  %v1284_v45 = vand.u32 2147483647, %v3244_v13 }
 0x45e   : > { %2348 = vmatmul.msk.f32.vlgmr.msra.gmra.mxu0 %vm851_vm8, %v1497_v20  ;;  %v1452_v1 = vunpack.c.l.b16 %v1426_v7 }
 0x45f   : > { %v1249_v58 = vadd.f32 %v2597_v16, %v1248_v50 }
 0x460   : > { %v3280_v21 = vpop.xlane.xlu0 %1162  ;;  %v3282_v15 = vpop.eup %2600  ;;  %v1453_v59 = vpack.c.b16 %v1452_v1, %v1451_v6 }
 0x461   : > { %v1566_v60 = vpop.permute.xlu2 %1565  ;;  %v3284_v61 = vpop.eup %2602  ;;  %v1291_v2 = vmul.f32 %v3282_v15, %v3263_v41  ;;  %2608 = vrcp.f32 %v3280_v21  ;;  %v1253_v8 = vsel %vm1252_vm15, %v2597_v16, %v1249_v58  ;;  %vm1296_vm7 = vweird.f32 %v3282_v15 }
 0x462   : > { %1578 = vmatpush.bf16.msrb.mxu2 %v1566_v60  ;;  %v2605_v0 = vpop.eup %2604  ;;  %2610 = vpow2.f32 %v1127_v54  ;;  %v1276_v63 = vmul.f32 %v3284_v61, %v3244_v13  ;;  %v1258_v23 = vsel %vm1255_vm1, %v1257_v18, %v1253_v8  ;;  %vm1281_vm10 = vweird.f32 %v3284_v61  ;;  %vm3333_vm14 = vmor %vm1295_vm11, %vm1296_vm7 }
 0x463   : > { %v3292_v4 = vpop.eup %2606  ;;  %v1261_v5 = vmul.f32 %v2605_v0, %v3260_v36  ;;  %v1292_v19 = vsub.f32 1.0, %v1291_v2  ;;  %vm1266_vm2 = vweird.f32 %v2605_v0  ;;  %2346 = vmatmul.msk.bf16.vlgmr.msra.gmra.mxu2 %vm1040_vm9, %v1453_v59  ;;  %v1259_v35 = vmul.f32 %v3185_v28, %v1258_v23  ;;  %vm3343_vm1 = vmor %vm1280_vm6, %vm1281_vm10 }
 0x464   : > { %v1321_v9 = vmul.f32 %v3292_v4, %v3266_v46  ;;  %v1277_v30 = vsub.f32 1.0, %v1276_v63  ;;  %vm1267_vm4 = vmor %vm1265_vm3, %vm1266_vm2  ;;  %v1286_v28 = vand.u32 2147483648, %v3244_v13  ;;  %v1301_v54 = vand.u32 2147483648, %v3263_v41 }
 0x465   : > { %v1499_v11 = vpop.f32.mrf.mxu3  ;;  %v1262_v14 = vsub.f32 1.0, %v1261_v5  ;;  %v1293_v26 = vmul.f32 %v3282_v15, %v1292_v19  ;;  %v1429_v50 = vpack.c.bf16 %v1259_v35, %v1259_v35  ;;  %vm1326_vm13 = vweird.f32 %v3292_v4 }
 0x466   : > { %2349 = vmatmul.msk.f32.vlgmr.msrb.gmra.mxu1 %vm851_vm8, %v1499_v11  ;;  %v1322_v16 = vsub.f32 1.0, %v1321_v9  ;;  %v1278_v42 = vmul.f32 %v3284_v61, %v1277_v30  ;;  %vm1310_vm15 = vweird.f32 %v3280_v21  ;;  %v1316_v1 = vand.u32 2147483648, %v3280_v21 }
 0x467   : > { %v1263_v25 = vmul.f32 %v2605_v0, %v1262_v14  ;;  %v3302_v27 = vpop.eup %2608  ;;  %v1294_v7 = vadd.f32 %v3282_v15, %v1293_v26  ;;  %v1562_v2 = vunpack.c.l.b16 %v1429_v50  ;;  %v1314_v63 = vand.u32 2147483647, %v3280_v21 }
 0x468   : > { %v3305_v31 = vpop.eup %2610  ;;  %v1306_v34 = vmul.f32 %v3302_v27, %v3280_v21  ;;  %v1323_v20 = vmul.f32 %v3292_v4, %v1322_v16  ;;  %v1279_v58 = vadd.f32 %v3284_v61, %v1278_v42  ;;  %vm1311_vm12 = vweird.f32 %v3302_v27  ;;  %v3330_v24 = vpop.xlane.xlu0 %1174 }
 0x469   : > { %v1264_v32 = vadd.f32 %v2605_v0, %v1263_v25  ;;  %v1170_v36 = vsel %vm1040_vm9, %v3305_v31, 0.0  ;;  %v1298_v6 = vsel %vm3333_vm14, %v3282_v15, %v1294_v7  ;;  %vm1325_vm2 = vweird.f32 %v3266_v46  ;;  %vm1312_vm3 = vmor %vm1310_vm15, %vm1311_vm12 }
 0x46a   : > { %v1307_v40 = vsub.f32 1.0, %v1306_v34  ;;  %v1324_v5 = vadd.f32 %v3292_v4, %v1323_v20  ;;  %v1329_v8 = vand.u32 2147483647, %v3266_v46  ;;  %v1331_v13 = vand.u32 2147483648, %v3266_v46 }
 0x46b   : > { %v1268_v39 = vsel %vm1267_vm4, %v2605_v0, %v1264_v32  ;;  %v1302_v11 = vor.u32 1.1754944e-38, %v1301_v54  ;;  %v1283_v18 = vsel %vm3343_vm1, %v3284_v61, %v1279_v58  ;;  %v1287_v21 = vor.u32 1.1754944e-38, %v1286_v28 }
 0x46c   : > { %v1273_v44 = vsel %vm1270_vm5, %v1272_v17, %v1268_v39  ;;  %v1308_v48 = vmul.f32 %v3302_v27, %v1307_v40  ;;  %vm1327_vm5 = vmor %vm1325_vm2, %vm1326_vm13  ;;  %v1317_v19 = vor.u32 1.1754944e-38, %v1316_v1  ;;  %vm1285_vm6 = vcmp.eq.f32.partialorder %v1284_v45, 8.507059e+37 }
 0x46d   : > { %v1274_v47 = vmul.f32 %v3197_v55, %v1273_v44  ;;  %v1299_v55 = vand.u32 2147483647, %v3263_v41  ;;  %v1328_v46 = vsel %vm1327_vm5, %v3292_v4, %v1324_v5  ;;  %vm1315_vm7 = vcmp.eq.f32.partialorder %v1314_v63, 8.507059e+37 }
 0x46e   : > { %v1309_v60 = vadd.f32 %v3302_v27, %v1308_v48  ;;  %v1288_v3 = vsel %vm1285_vm6, %v1287_v21, %v1283_v18  ;;  %v1332_v59 = vor.u32 1.1754944e-38, %v1331_v13  ;;  %vm1330_vm10 = vcmp.eq.f32.partialorder %v1329_v8, 8.507059e+37  ;;  %v1441_v18 = vld [vmem:[%s3572_s9] sm:$0xff] }
 0x46f   : > { %v1430_v56 = vpack.c.bf16 %v1274_v47, %v1274_v47  ;;  %vm1300_vm4 = vcmp.eq.f32.partialorder %v1299_v55, 8.507059e+37  ;;  %v1289_v12 = vmul.f32 %v3188_v29, %v1288_v3  ;;  %2612 = vrcp.f32 %v3330_v24  ;;  %1552 = vmatpush.msra.mxu1 %v1441_v18 }
 0x470   : > { %v1678_v51 = vpop.permute.xlu1 %1677  ;;  %v1313_v15 = vsel %vm1312_vm3, %v3302_v27, %v1309_v60  ;;  %v1303_v9 = vsel %vm1300_vm4, %v1302_v11, %v1298_v6  ;;  %v1333_v25 = vsel %vm1330_vm10, %v1332_v59, %v1328_v46  ;;  %v3368_v30 = vpop.xlane.xlu0 %1168  ;;  %vm1370_vm15 = vweird.f32 %v3330_v24  ;;  %v1444_v46 = vld [vmem:[%s3572_s9 + $0x18] sm:$0xff] }
 0x471   : > { %1690 = vmatpush.bf16.msra.mxu2 %v1678_v51  ;;  %v1563_v0 = vunpack.c.l.b16 %v1430_v56  ;;  %v1318_v23 = vsel %vm1315_vm7, %v1317_v19, %v1313_v15  ;;  %v1304_v61 = vmul.f32 %v3201_v38, %v1303_v9  ;;  %v1334_v32 = vmul.f32 %v3199_v37, %v1333_v25  ;;  %1662 = vmatpush.msrb.mxu1 %v1444_v46 }
 0x472   : > { %v1319_v27 = vmul.f32 %v3209_v43, %v1318_v23  ;;  %v1431_v4 = vpack.c.bf16 %v1289_v12, %v1289_v12  ;;  %v1376_v56 = vand.u32 2147483648, %v3330_v24  ;;  %v1374_v51 = vand.u32 2147483647, %v3330_v24 }
 0x473   : > { %1171 = vadd.xlane.f32.xlu1 %v1170_v36  ;;  %v1564_v14 = vpack.c.b16 %v1563_v0, %v1562_v2  ;;  %v1432_v34 = vpack.c.bf16 %v1304_v61, %v1304_v61  ;;  %v1434_v16 = vpack.c.bf16 %v1334_v32, %v1334_v32  ;;  %v1346_v61 = vand.u32 2147483648, %v3368_v30 }
 0x474   : > { %v1433_v35 = vpack.c.bf16 %v1319_v27, %v1319_v27  ;;  %v1618_v17 = vunpack.c.l.b16 %v1431_v4  ;;  %v1377_v62 = vor.u32 1.1754944e-38, %v1376_v56  ;;  %vm1375_vm3 = vcmp.eq.f32.partialorder %v1374_v51, 8.507059e+37  ;;  %v1445_v27 = vld [vmem:[%s3572_s9 + $0x20] sm:$0xff] }
 0x475   : > { %2352 = vmatmul.msk.bf16.vlgmr.msrb.gmra.mxu2 %vm1040_vm9, %v1564_v14  ;;  %v1619_v26 = vunpack.c.l.b16 %v1432_v34  ;;  %v1675_v38 = vunpack.c.l.b16 %v1434_v16  ;;  %v2613_v29 = vpop.eup %2612  ;;  %vm1340_vm5 = vweird.f32 %v3368_v30  ;;  %v1344_v12 = vand.u32 2147483647, %v3368_v30 }
 0x476   : > { %v1674_v39 = vunpack.c.l.b16 %v1433_v35  ;;  %v1366_v43 = vmul.f32 %v2613_v29, %v3330_v24  ;;  %vm1371_vm12 = vweird.f32 %v2613_v29  ;;  %v1347_v16 = vor.u32 1.1754944e-38, %v1346_v61  ;;  %v1446_v61 = vld [vmem:[%s3572_s9 + $0x28] sm:$0xff] }
 0x477   : > { %v1620_v42 = vpack.c.b16 %v1619_v26, %v1618_v17  ;;  %vm1372_vm1 = vmor %vm1370_vm15, %vm1371_vm12  ;;  %vm1345_vm7 = vcmp.eq.f32.partialorder %v1344_v12, 8.507059e+37 }
 0x478   : > { %v1676_v44 = vpack.c.b16 %v1675_v38, %v1674_v39  ;;  %v1367_v36 = vsub.f32 1.0, %v1366_v43 }
 0x47a   : > { %v1368_v47 = vmul.f32 %v2613_v29, %v1367_v36 }
 0x47c   : > { %v1369_v7 = vadd.f32 %v2613_v29, %v1368_v47 }
 0x47e   : > { %v1373_v60 = vsel %vm1372_vm1, %v2613_v29, %v1369_v7 }
 0x47f   : > { %v1378_v1 = vsel %vm1375_vm3, %v1377_v62, %v1373_v60 }
 0x480   : > { %v1379_v2 = vmul.f32 %v3215_v49, %v1378_v1  ;;  %v1443_v49 = vld [vmem:[%s3572_s9 + $0x10] sm:$0xff] }
 0x481   : > { %1606 = vmatpush.msrb.mxu3 %v1443_v49 }
 0x482   : > { %v1437_v63 = vpack.c.bf16 %v1379_v2, %v1379_v2 }
 0x483   : > { %v1622_v40 = vpop.permute.xlu0 %1621  ;;  %1718 = vmatpush.msra.mxu3 %v1445_v27 }
 0x484   : > { %1634 = vmatpush.bf16.msrb.mxu0 %v1622_v40  ;;  %v1786_v13 = vunpack.c.l.b16 %v1437_v63 }
 0x485   : > { %2358 = vmatmul.msk.bf16.vlgmr.msra.gmra.mxu2 %vm1040_vm9, %v1676_v44 }
 0x487   : > { %2355 = vmatmul.msk.bf16.vlgmr.msrb.gmra.mxu0 %vm1040_vm9, %v1620_v42 }
 0x48c   : > { %1845 = vrot.lane.b32.xlu1 %v3091_v33, %s2847_s26 }
 0x49b   : > { %v1178_v37 = vpop.xlane.xlu1 %1177 }
 0x49c   : > { %2614 = vrcp.f32 %v1178_v37  ;;  %v1391_v20 = vand.u32 2147483648, %v1178_v37  ;;  %vm1385_vm13 = vweird.f32 %v1178_v37  ;;  %v1389_v33 = vand.u32 2147483647, %v1178_v37 }
 0x49d   : > { %2616 = vrcp.f32 %v3368_v30 }
 0x49e   : > { %v1392_v55 = vor.u32 1.1754944e-38, %v1391_v20  ;;  %vm1390_vm2 = vcmp.eq.f32.partialorder %v1389_v33, 8.507059e+37 }
 0x4a2   : > { %v2615_v45 = vpop.eup %2614 }
 0x4a3   : > { %v1381_v28 = vmul.f32 %v2615_v45, %v1178_v37  ;;  %vm1386_vm11 = vweird.f32 %v2615_v45 }
 0x4a4   : > { %vm1387_vm14 = vmor %vm1385_vm13, %vm1386_vm11 }
 0x4a5   : > { %v1382_v48 = vsub.f32 1.0, %v1381_v28 }
 0x4a7   : > { %v1383_v50 = vmul.f32 %v2615_v45, %v1382_v48 }
 0x4a9   : > { %v1384_v54 = vadd.f32 %v2615_v45, %v1383_v50 }
 0x4ab   : > { %v1388_v58 = vsel %vm1387_vm14, %v2615_v45, %v1384_v54 }
 0x4ac   : > { %v1393_v0 = vsel %vm1390_vm2, %v1392_v55, %v1388_v58 }
 0x4ad   : > { %v1394_v41 = vmul.f32 %v3232_v57, %v1393_v0  ;;  %v2617_v57 = vpop.eup %2616 }
 0x4ae   : > { %v1336_v15 = vmul.f32 %v2617_v57, %v3368_v30  ;;  %vm1341_vm4 = vweird.f32 %v2617_v57 }
 0x4af   : > { %v1438_v6 = vpack.c.bf16 %v1394_v41, %v1394_v41  ;;  %vm1342_vm6 = vmor %vm1340_vm5, %vm1341_vm4 }
 0x4b0   : > { %v1337_v21 = vsub.f32 1.0, %v1336_v15 }
 0x4b1   : > { %v1787_v8 = vunpack.c.l.b16 %v1438_v6 }
 0x4b2   : > { %v1338_v19 = vmul.f32 %v2617_v57, %v1337_v21 }
 0x4b3   : > { %v1734_v5 = vpop.permute.xlu1 %1733  ;;  %v1788_v11 = vpack.c.b16 %v1787_v8, %v1786_v13 }
 0x4b4   : > { %1746 = vmatpush.bf16.msra.mxu0 %v1734_v5  ;;  %v1339_v23 = vadd.f32 %v2617_v57, %v1338_v19 }
 0x4b6   : > { %v1343_v35 = vsel %vm1342_vm6, %v2617_v57, %v1339_v23 }
 0x4b7   : > { %v1348_v30 = vsel %vm1345_vm7, %v1347_v16, %v1343_v35 }
 0x4b8   : > { %v1349_v37 = vmul.f32 %v3219_v52, %v1348_v30 }
 0x4ba   : > { %v1435_v50 = vpack.c.bf16 %v1349_v37, %v1349_v37 }
 0x4bb   : > { %v1790_v24 = vpop.permute.xlu1 %1789 }
 0x4bc   : > { %1802 = vmatpush.bf16.msrb.mxu2 %v1790_v24  ;;  %v1730_v58 = vunpack.c.l.b16 %v1435_v50 }
 0x4bf   : > { %2364 = vmatmul.msk.bf16.vlgmr.msrb.gmra.mxu2 %vm1040_vm9, %v1788_v11 }
 0x4c8   : > { %v3393_v9 = vpop.xlane.xlu2 %1180 }
 0x4c9   : > { %v1406_v55 = vand.u32 2147483648, %v3393_v9  ;;  %vm1400_vm3 = vweird.f32 %v3393_v9 }
 0x4cb   : > { %v1407_v8 = vor.u32 1.1754944e-38, %v1406_v55 }
 0x4d0   : > { %v3391_v14 = vpop.xlane.xlu0 %1183 }
 0x4d1   : > { %2618 = vrcp.f32 %v3391_v14  ;;  %v1421_v54 = vand.u32 2147483648, %v3391_v14  ;;  %vm1415_vm1 = vweird.f32 %v3391_v14  ;;  %v1419_v56 = vand.u32 2147483647, %v3391_v14 }
 0x4d2   : > { %2620 = vrcp.f32 %v3393_v9 }
 0x4d3   : > { %v1422_v2 = vor.u32 1.1754944e-38, %v1421_v54  ;;  %vm1420_vm5 = vcmp.eq.f32.partialorder %v1419_v56, 8.507059e+37 }
 0x4d7   : > { %v3400_v59 = vpop.eup %2618 }
 0x4d8   : > { %v3403_v25 = vpop.eup %2620  ;;  %v1411_v32 = vmul.f32 %v3400_v59, %v3391_v14  ;;  %vm1416_vm14 = vweird.f32 %v3400_v59 }
 0x4d9   : > { %v1396_v26 = vmul.f32 %v3403_v25, %v3393_v9  ;;  %vm1401_vm15 = vweird.f32 %v3403_v25  ;;  %vm3428_vm2 = vmor %vm1415_vm1, %vm1416_vm14 }
 0x4da   : > { %v1412_v39 = vsub.f32 1.0, %v1411_v32  ;;  %vm1402_vm4 = vmor %vm1400_vm3, %vm1401_vm15 }
 0x4db   : > { %v1397_v42 = vsub.f32 1.0, %v1396_v26  ;;  %v1525_v0 = vpop.f32.mrf.mxu0 }
 0x4dc   : > { %v1413_v43 = vmul.f32 %v3400_v59, %v1412_v39 }
 0x4dd   : > { %v1398_v47 = vmul.f32 %v3403_v25, %v1397_v42 }
 0x4de   : > { %v1414_v7 = vadd.f32 %v3400_v59, %v1413_v43 }
 0x4df   : > { %v1399_v33 = vadd.f32 %v3403_v25, %v1398_v47 }
 0x4e0   : > { %v1418_v62 = vsel %vm3428_vm2, %v3400_v59, %v1414_v7  ;;  %v2549_v7 = vld [vmem:[%s3573_s10] ss:$0 sm:$0xff] }
 0x4e1   : > { %v1403_v5 = vsel %vm1402_vm4, %v3403_v25, %v1399_v33  ;;  %v1423_v13 = vsel %vm1420_vm5, %v1422_v2, %v1418_v62  ;;  %v1448_v25 = vld [vmem:[%s3572_s9 + $0x38] sm:$0xff]  ;;  %v2637_v2 = vld [vmem:[%s3041_s27 + $0x8] sm:$0xff] }
 0x4e2   : > { %v1424_v11 = vmul.f32 %v3274_v53, %v1423_v13  ;;  %v1447_v53 = vld [vmem:[%s3572_s9 + $0x30] sm:$0xff] }
 0x4e4   : > { %v1440_v15 = vpack.c.bf16 %v1424_v11, %v1424_v11 }
 0x4e6   : > { %v1172_v3 = vpop.xlane.xlu1 %1171  ;;  %v1472_v34 = vpop.f32.mrf.mxu2  ;;  %v1843_v21 = vunpack.c.l.b16 %v1440_v15 }
 0x4e7   : > { %2622 = vrcp.f32 %v1172_v3  ;;  %2350 = vmatmul.msk.f32.vlgmr.msra.gmra.mxu1 %vm851_vm8, %v1472_v34  ;;  %v1361_v38 = vand.u32 2147483648, %v1172_v3  ;;  %v1359_v29 = vand.u32 2147483647, %v1172_v3  ;;  %vm1355_vm11 = vweird.f32 %v1172_v3 }
 0x4e8   : > { %1774 = vmatpush.msra.mxu1 %v1446_v61 }
 0x4e9   : > { %v1362_v28 = vor.u32 1.1754944e-38, %v1361_v38  ;;  %vm1360_vm13 = vcmp.eq.f32.partialorder %v1359_v29, 8.507059e+37 }
 0x4ed   : > { %v2623_v4 = vpop.eup %2622 }
 0x4ee   : > { %v1351_v17 = vmul.f32 %v2623_v4, %v1172_v3  ;;  %vm1356_vm10 = vweird.f32 %v2623_v4  ;;  %v1474_v45 = vpop.f32.mrf.mxu2 }
 0x4ef   : > { %vm1357_vm12 = vmor %vm1355_vm11, %vm1356_vm10  ;;  %2351 = vmatmul.msk.f32.gmra.mxu1 %vm851_vm8, %v1474_v45 }
 0x4f0   : > { %v1352_v40 = vsub.f32 1.0, %v1351_v17 }
 0x4f2   : > { %v1353_v44 = vmul.f32 %v2623_v4, %v1352_v40 }
 0x4f4   : > { %v1354_v36 = vadd.f32 %v2623_v4, %v1353_v44 }
 0x4f6   : > { %v1358_v48 = vsel %vm1357_vm12, %v2623_v4, %v1354_v36  ;;  %v1528_v4 = vpop.f32.mrf.mxu1 }
 0x4f7   : > { %v1363_v20 = vsel %vm1360_vm13, %v1362_v28, %v1358_v48 }
 0x4f8   : > { %v1364_v52 = vmul.f32 %v3305_v31, %v1363_v20  ;;  %v1404_v31 = vand.u32 2147483647, %v3393_v9  ;;  %v1580_v41 = vpop.f32.mrf.mxu2 }
 0x4f9   : > { %2353 = vmatmul.msk.f32.vlgmr.msrb.gmra.mxu3 %vm851_vm8, %v1580_v41 }
 0x4fa   : > { %v1436_v51 = vpack.c.bf16 %v1364_v52, %v1364_v52  ;;  %vm1405_vm6 = vcmp.eq.f32.partialorder %v1404_v31, 8.507059e+37  ;;  %1830 = vmatpush.msrb.mxu3 %v1447_v53  ;;  %v2437_v53 = vld [vmem:[#allocation8] sm:$0xff] }
 0x4fb   : > { %v1408_v24 = vsel %vm1405_vm6, %v1407_v8, %v1403_v5 }
 0x4fc   : > { %v1731_v1 = vunpack.c.l.b16 %v1436_v51  ;;  %v1409_v18 = vmul.f32 %v3249_v22, %v1408_v24 }
 0x4fe   : > { %v1846_v6 = vpop.permute.xlu1 %1845  ;;  %v1732_v63 = vpack.c.b16 %v1731_v1, %v1730_v58  ;;  %v1439_v14 = vpack.c.bf16 %v1409_v18, %v1409_v18  ;;  %v2636_v58 = vld [vmem:[%s3041_s27] sm:$0xff]  ;;  %s2166_s27 = sshll.u32 %s608_s29, 4  ;;  %s2167_s27 = int_to_ptr.vmem [resolvable:$true] %s2166_s27 }
 0x4ff   : > { %1858 = vmatpush.bf16.msrb.mxu0 %v1846_v6 }
 0x500   : > { %2361 = vmatmul.msk.bf16.vlgmr.msra.gmra.mxu0 %vm1040_vm9, %v1732_v63  ;;  %v1582_v57 = vpop.f32.mrf.mxu2  ;;  %v1842_v9 = vunpack.c.l.b16 %v1439_v14 }
 0x501   : > { %2354 = vmatmul.msk.f32.gmra.mxu3 %vm851_vm8, %v1582_v57 }
 0x502   : > { %v1844_v3 = vpack.c.b16 %v1843_v21, %v1842_v9  ;;  %v2440_v21 = vld [vmem:[#allocation8 + $0x18] sm:$0xff] }
 0x503   : > { %2004 = vmatpush.bf16.msra.mxu2 %v2440_v21 }
 0x504   : > { %v1636_v49 = vpop.f32.mrf.mxu0 }
 0x505   : > { %2356 = vmatmul.msk.f32.vlgmr.msrb.gmra.mxu1 %vm851_vm8, %v1636_v49 }
 0x506   : > { %1886 = vmatpush.msrb.mxu1 %v1448_v25 }
 0x508   : > { %v1692_v19 = vpop.f32.mrf.mxu2 }
 0x509   : > { %2359 = vmatmul.msk.f32.vlgmr.msra.gmra.mxu3 %vm851_vm8, %v1692_v19 }
 0x50c   : > { %v1638_v46 = vpop.f32.mrf.mxu0 }
 0x50d   : > { %2357 = vmatmul.msk.f32.gmra.mxu1 %vm851_vm8, %v1638_v46  ;;  %v2439_v46 = vld [vmem:[#allocation8 + $0x10] sm:$0xff] }
 0x50e   : > { %2005 = vmatpush.bf16.msra.mxu2 %v2439_v46 }
 0x510   : > { %2367 = vmatmul.msk.bf16.vlgmr.msrb.gmra.mxu0 %vm1040_vm9, %v1844_v3  ;;  %v1694_v22 = vpop.f32.mrf.mxu2 }
 0x511   : > { %2360 = vmatmul.msk.f32.gmra.mxu3 %vm851_vm8, %v1694_v22  ;;  %v2438_v22 = vld [vmem:[#allocation8 + $0x8] sm:$0xff] }
 0x512   : > { %2006 = vmatpush.bf16.msra.mxu2 %v2438_v22 }
 0x516   : > { %2007 = vmatpush.bf16.msra.mxu2 %v2437_v53 }
 0x542   : > { %v1804_v59 = vpop.f32.mrf.mxu2 }
 0x543   : > { %2365 = vmatmul.msk.f32.vlgmr.msrb.gmra.mxu3 %vm851_vm8, %v1804_v59 }
 0x54a   : > { %v1806_v23 = vpop.f32.mrf.mxu2 }
 0x54b   : > { %2366 = vmatmul.msk.f32.gmra.mxu3 %vm851_vm8, %v1806_v23 }
 0x564   : > { %v1554_v35 = vpop.f32.mrf.mxu1 }
 0x565   : > { %v1555_v42 = vadd.f32 %v1554_v35, %v1525_v0 }
 0x56c   : > { %v1557_v16 = vpop.f32.mrf.mxu1 }
 0x56d   : > { %v1558_v45 = vadd.f32 %v1557_v16, %v1528_v4 }
 0x57c   : > { %v1608_v26 = vpop.f32.mrf.mxu3 }
 0x57d   : > { %v1748_v12 = vpop.f32.mrf.mxu0  ;;  %v1614_v29 = vadd.f32 %v1608_v26, %v1555_v42 }
 0x57e   : > { %2362 = vmatmul.msk.f32.vlgmr.msra.gmra.mxu1 %vm851_vm8, %v1748_v12 }
 0x582   : > { %v1664_v17 = vpop.f32.mrf.mxu1 }
 0x583   : > { %v1670_v37 = vadd.f32 %v1664_v17, %v1614_v29 }
 0x584   : > { %v1611_v30 = vpop.f32.mrf.mxu3 }
 0x585   : > { %v1750_v27 = vpop.f32.mrf.mxu0  ;;  %v1615_v48 = vadd.f32 %v1611_v30, %v1558_v45 }
 0x586   : > { %2363 = vmatmul.msk.f32.gmra.mxu1 %vm851_vm8, %v1750_v27 }
 0x58a   : > { %v1667_v39 = vpop.f32.mrf.mxu1 }
 0x58b   : > { %v1671_v50 = vadd.f32 %v1667_v39, %v1615_v48  ;;  %v2448_v48 = vld [vmem:[%s3578_s15 + $0x38] sm:$0xff] }
 0x58c   : > { %v1720_v40 = vpop.f32.mrf.mxu3  ;;  %2135 = vmatpush.bf16.msra.mxu3 %v2448_v48 }
 0x58d   : > { %v1860_v32 = vpop.f32.mrf.mxu0  ;;  %v1726_v36 = vadd.f32 %v1720_v40, %v1670_v37 }
 0x58e   : > { %2368 = vmatmul.msk.f32.vlgmr.msrb.gmra.mxu1 %vm851_vm8, %v1860_v32 }
 0x594   : > { %v1723_v44 = vpop.f32.mrf.mxu3 }
 0x595   : > { %v1862_v34 = vpop.f32.mrf.mxu0  ;;  %v1727_v54 = vadd.f32 %v1723_v44, %v1671_v50  ;;  %v2551_v44 = vld [vmem:[%s3575_s12] ss:$0 sm:$0xff] }
 0x596   : > { %2369 = vmatmul.msk.f32.gmra.mxu1 %vm851_vm8, %v1862_v34 }
 0x5c6   : > { %v1832_v47 = vpop.f32.mrf.mxu3 }
 0x5ce   : > { %v1835_v60 = vpop.f32.mrf.mxu3 }
 0x5fb   : > { %v1776_v38 = vpop.f32.mrf.mxu1 }
 0x5fc   : > { %v1782_v28 = vadd.f32 %v1776_v38, %v1726_v36 }
 0x5fe   : > { %v1838_v20 = vadd.f32 %v1832_v47, %v1782_v28  ;;  %v2552_v47 = vld [vmem:[%s3577_s14] ss:$0 sm:$0xff] }
 0x603   : > { %v1779_v43 = vpop.f32.mrf.mxu1 }
 0x604   : > { %v1783_v56 = vadd.f32 %v1779_v43, %v1727_v54 }
 0x606   : > { %v1839_v62 = vadd.f32 %v1835_v60, %v1783_v56 }
 0x60b   : > { %v1888_v52 = vpop.f32.mrf.mxu1 }
 0x60c   : > { %v1894_v33 = vadd.f32 %v1888_v52, %v1838_v20 }
 0x60e   : > { %v1900_v51 = vadd.f32 %v2549_v7, %v1894_v33  ;;  %v2446_v33 = vld [vmem:[%s3578_s15 + $0x28] sm:$0xff] }
 0x610   : > { %v3469_v55 = vadd.f32 %v2636_v58, %v1900_v51 }
 0x612   : > { %v1906_v31 = vsel %vm619_vm0, %v3469_v55, 0.0 }
 0x613   : > { %1907 = vadd.xlane.f32.xlu2 %v1906_v31  ;;  %v1891_v0 = vpop.f32.mrf.mxu1  ;;  %v2445_v31 = vld [vmem:[%s3578_s15 + $0x20] sm:$0xff] }
 0x614   : > { %v1895_v1 = vadd.f32 %v1891_v0, %v1839_v62 }
 0x616   : > { %v1901_v41 = vadd.f32 %v2549_v7, %v1895_v1  ;;  %v2447_v7 = vld [vmem:[%s3578_s15 + $0x30] sm:$0xff]  ;;  %v2444_v1 = vld [vmem:[%s3578_s15 + $0x18] sm:$0xff] }
 0x617   : > { %2136 = vmatpush.bf16.msra.mxu3 %v2447_v7  ;;  %v2553_v7 = vld [vmem:[%s3619_s3] ss:$0 sm:$0xff] }
 0x618   : > { %v3474_v5 = vadd.f32 %v2637_v2, %v1901_v41 }
 0x61a   : > { %v1909_v6 = vsel %vm619_vm0, %v3474_v5, 0.0 }
 0x61b   : > { %1910 = vadd.xlane.f32.xlu1 %v1909_v6  ;;  %2137 = vmatpush.bf16.msra.mxu3 %v2446_v33 }
 0x61f   : > { %2138 = vmatpush.bf16.msra.mxu3 %v2445_v31 }
 0x623   : > { %2139 = vmatpush.bf16.msra.mxu3 %v2444_v1 }
 0x686   : > { %v1908_v63 = vpop.xlane.xlu2 %1907 }
 0x687   : > { %v1912_v8 = vmul.f32 %v1908_v63, %v3047_v10 }
 0x689   : > { %v1914_v13 = vsub.f32 %v3469_v55, %v1912_v8 }
 0x68b   : > { %v1916_v24 = vmul.f32 %v1914_v13, %v1914_v13 }
 0x68d   : > { %v1918_v11 = vsel %vm619_vm0, %v1916_v24, 0.0 }
 0x68e   : > { %1919 = vadd.xlane.f32.xlu2 %v1918_v11  ;;  %v1911_v18 = vpop.xlane.xlu1 %1910 }
 0x68f   : > { %v1913_v57 = vmul.f32 %v1911_v18, %v3047_v10 }
 0x691   : > { %v1915_v49 = vsub.f32 %v3474_v5, %v1913_v57  ;;  %v2442_v57 = vld [vmem:[%s3578_s15 + $0x8] sm:$0xff] }
 0x693   : > { %v1917_v15 = vmul.f32 %v1915_v49, %v1915_v49 }
 0x695   : > { %v1921_v14 = vsel %vm619_vm0, %v1917_v15, 0.0  ;;  %v2441_v15 = vld [vmem:[%s3578_s15] sm:$0xff] }
 0x696   : > { %1922 = vadd.xlane.f32.xlu2 %v1921_v14 }
 0x701   : > { %v1920_v9 = vpop.xlane.xlu2 %1919 }
 0x702   : > { %v1924_v19 = vmul.f32 %v1920_v9, %v3047_v10 }
 0x704   : > { %v1926_v3 = vadd.f32 1e-06, %v1924_v19 }
 0x706   : > { %2624 = vrsqrt.f32 %v1926_v3  ;;  %vm1934_vm9 = vweird.f32 %v1926_v3 }
 0x709   : > { %v1923_v59 = vpop.xlane.xlu2 %1922 }
 0x70a   : > { %v1925_v23 = vmul.f32 %v1923_v59, %v3047_v10  ;;  %v2550_v10 = vld [vmem:[%s3574_s11] ss:$0 sm:$0xff] }
 0x70c   : > { %v2625_v61 = vpop.eup %2624  ;;  %v1927_v25 = vadd.f32 1e-06, %v1925_v23 }
 0x70d   : > { %v1929_v12 = vmul.f32 %v2625_v61, %v1926_v3  ;;  %vm1935_vm8 = vweird.f32 %v2625_v61 }
 0x70e   : > { %2626 = vrsqrt.f32 %v1927_v25  ;;  %vm1936_vm7 = vmor %vm1934_vm9, %vm1935_vm8  ;;  %vm1944_vm11 = vweird.f32 %v1927_v25 }
 0x70f   : > { %v1930_v27 = vmul.f32 %v2625_v61, %v1929_v12 }
 0x711   : > { %v1931_v32 = vmul.f32 0.5, %v1930_v27 }
 0x713   : > { %v1932_v34 = vsub.f32 1.5, %v1931_v32 }
 0x714   : > { %v2627_v4 = vpop.eup %2626 }
 0x715   : > { %v1933_v35 = vmul.f32 %v2625_v61, %v1932_v34  ;;  %v1939_v16 = vmul.f32 %v2627_v4, %v1927_v25  ;;  %vm1945_vm10 = vweird.f32 %v2627_v4 }
 0x716   : > { %vm1946_vm12 = vmor %vm1944_vm11, %vm1945_vm10 }
 0x717   : > { %v1940_v26 = vmul.f32 %v2627_v4, %v1939_v16  ;;  %v1937_v17 = vsel %vm1936_vm7, %v2625_v61, %v1933_v35 }
 0x718   : > { %v1948_v40 = vmul.f32 %v1937_v17, %v1914_v13  ;;  %v2443_v13 = vld [vmem:[%s3578_s15 + $0x10] sm:$0xff] }
 0x719   : > { %v1941_v30 = vmul.f32 0.5, %v1940_v26  ;;  %2140 = vmatpush.bf16.msra.mxu3 %v2443_v13 }
 0x71a   : > { %v1953_v29 = vmul.f32 %v2550_v10, %v1948_v40 }
 0x71b   : > { %v1942_v39 = vsub.f32 1.5, %v1941_v30 }
 0x71c   : > { %v1958_v36 = vadd.f32 %v2551_v44, %v1953_v29 }
 0x71d   : > { %v1943_v38 = vmul.f32 %v2627_v4, %v1942_v39  ;;  %2141 = vmatpush.bf16.msra.mxu3 %v2442_v57 }
 0x71f   : > { %v1947_v42 = vsel %vm1946_vm12, %v2627_v4, %v1943_v38 }
 0x720   : > { %v1949_v37 = vmul.f32 %v1947_v42, %v1915_v49 }
 0x721   : > { %2142 = vmatpush.bf16.msra.mxu3 %v2441_v15 }
 0x722   : > { %v1954_v43 = vmul.f32 %v2550_v10, %v1949_v37  ;;  %v2848_v10 = vmov -1.0  }
 0x724   : > { %v1959_v45 = vadd.f32 %v2551_v44, %v1954_v43 }
 0x726   : > { %v1960_v28 = vpack.c.bf16 %v1959_v45, %v1958_v36 }
 0x728   : > { %2386 = vmatmul.msk.bf16.vlgmr.msra.gmra.mxu2 %vm619_vm0, %v1960_v28 }
 0x7ab   : > { %v2009_v50 = vpop.f32.mrf.mxu2 }
 0x7ac   : > { %v3499_v20 = vadd.f32 %v2552_v47, %v2009_v50 }
 0x7ae   : > { %v2016_v52 = vmul.f32 0.70710677, %v3499_v20  ;;  %v2014_v36 = vmul.f32 0.5, %v3499_v20 }
 0x7b0   : > { %v2022_v54 = vand.u32 2147483647, %v2016_v52  ;;  %vm2018_vm13 = vcmp.ge.f32.partialorder %v2016_v52, 0.0 }
 0x7b1   : > { %v2020_v40 = vsel %vm2018_vm13, 1.0, %v2848_v10 }
 0x7b2   : > { %v2024_v56 = vmul.f32 0.3275911, %v2022_v54  ;;  %v2048_v6 = vsub.f32 0.0, %v2022_v54 }
 0x7b3   : > { %v2011_v51 = vpop.f32.mrf.mxu2 }
 0x7b4   : > { %v2026_v58 = vadd.f32 1.0, %v2024_v56  ;;  %v2012_v60 = vadd.f32 %v2552_v47, %v2011_v51  ;;  %v2050_v11 = vmul.f32 %v2048_v6, %v2022_v54 }
 0x7b6   : > { %2628 = vrcp.f32 %v2026_v58  ;;  %v2017_v62 = vmul.f32 0.70710677, %v2012_v60  ;;  %v2052_v21 = vmul.f32 1.442695, %v2050_v11  ;;  %v2015_v45 = vmul.f32 0.5, %v2012_v60 }
 0x7b8   : > { %v2023_v0 = vand.u32 2147483647, %v2017_v62  ;;  %vm2019_vm14 = vcmp.ge.f32.partialorder %v2017_v62, 0.0 }
 0x7b9   : > { %v2021_v29 = vsel %vm2019_vm14, 1.0, %v2848_v10 }
 0x7ba   : > { %v2025_v41 = vmul.f32 0.3275911, %v2023_v0  ;;  %v2049_v9 = vsub.f32 0.0, %v2023_v0 }
 0x7bc   : > { %v2629_v2 = vpop.eup %2628  ;;  %v2027_v63 = vadd.f32 1.0, %v2025_v41  ;;  %v2051_v53 = vmul.f32 %v2049_v9, %v2023_v0 }
 0x7bd   : > { %v2030_v8 = vmul.f32 1.0614054, %v2629_v2 }
 0x7be   : > { %2630 = vrcp.f32 %v2027_v63  ;;  %v2054_v12 = vmul.f32 1.442695, %v2051_v53 }
 0x7bf   : > { %v2032_v24 = vadd.f32 -1.4531521, %v2030_v8  ;;  %2632 = vpow2.f32 %v2052_v21 }
 0x7c0   : > { %2634 = vpow2.f32 %v2054_v12 }
 0x7c1   : > { %v2034_v18 = vmul.f32 %v2629_v2, %v2032_v24 }
 0x7c3   : > { %v2036_v49 = vadd.f32 1.4214138, %v2034_v18 }
 0x7c4   : > { %v2631_v14 = vpop.eup %2630 }
 0x7c5   : > { %v2038_v19 = vmul.f32 %v2629_v2, %v2036_v49  ;;  %v2031_v46 = vmul.f32 1.0614054, %v2631_v14  ;;  %v2633_v34 = vpop.eup %2632 }
 0x7c6   : > { %v2635_v39 = vpop.eup %2634 }
 0x7c7   : > { %v2040_v3 = vadd.f32 -0.28449672, %v2038_v19  ;;  %v2033_v22 = vadd.f32 -1.4531521, %v2031_v46 }
 0x7c9   : > { %v2042_v59 = vmul.f32 %v2629_v2, %v2040_v3  ;;  %v2035_v23 = vmul.f32 %v2631_v14, %v2033_v22 }
 0x7cb   : > { %v2044_v61 = vadd.f32 0.2548296, %v2042_v59  ;;  %v2037_v25 = vadd.f32 1.4214138, %v2035_v23 }
 0x7cd   : > { %v2046_v27 = vmul.f32 %v2629_v2, %v2044_v61  ;;  %v2039_v32 = vmul.f32 %v2631_v14, %v2037_v25 }
 0x7cf   : > { %v2056_v4 = vmul.f32 %v2633_v34, %v2046_v27  ;;  %v2041_v35 = vadd.f32 -0.28449672, %v2039_v32 }
 0x7d1   : > { %v2043_v16 = vmul.f32 %v2631_v14, %v2041_v35  ;;  %v2058_v26 = vsub.f32 1.0, %v2056_v4 }
 0x7d3   : > { %v2045_v17 = vadd.f32 0.2548296, %v2043_v16  ;;  %v2060_v38 = vmul.f32 %v2058_v26, %v2020_v40 }
 0x7d5   : > { %v2047_v30 = vmul.f32 %v2631_v14, %v2045_v17  ;;  %v2062_v37 = vadd.f32 1.0, %v2060_v38 }
 0x7d7   : > { %v2057_v42 = vmul.f32 %v2635_v39, %v2047_v30  ;;  %v2064_v47 = vmul.f32 %v2062_v37, %v2014_v36 }
 0x7d9   : > { %v2059_v44 = vsub.f32 1.0, %v2057_v42 }
 0x7db   : > { %v2061_v43 = vmul.f32 %v2059_v44, %v2021_v29 }
 0x7dd   : > { %v2063_v28 = vadd.f32 1.0, %v2061_v43 }
 0x7df   : > { %v2065_v48 = vmul.f32 %v2063_v28, %v2015_v45 }
 0x7e1   : > { %v2066_v50 = vpack.c.bf16 %v2065_v48, %v2064_v47 }
 0x7e3   : > { %2143 = vmatmul.bf16.vlgmr.msra.gmra.mxu3 %v2066_v50 }
 0x866   : > { %v2144_v52 = vpop.f32.mrf.mxu3 }
 0x867   : > { %v2145_v54 = vadd.f32 %v2553_v7, %v2144_v52 }
 0x869   : > { %v2149_v33 = vadd.f32 %v2145_v54, %v3469_v55 }
 0x86b   : > { %2151 = vst.msk [vmem:[%s608_s29] sm:$0xff] %vm619_vm0, %v2149_v33 }
 0x86e   : > { %v2146_v20 = vpop.f32.mrf.mxu3 }
 0x86f   : > { %v2147_v56 = vadd.f32 %v2553_v7, %v2146_v20 }
 0x871   : > { %v2150_v51 = vadd.f32 %v2147_v56, %v3474_v5 }
 0x873   : > { %2152 = vst.msk [vmem:[%s608_s29 + $0x8] sm:$0xff] %vm619_vm0, %v2150_v51 }
 0x874   : > { %2785 = shalt.err (!%p2782_p8)
}
 0x875   : > { %s2849_s0 = smov 128   ;;  %s2850_s17 = smov 8  }
 0x876   : > { %2467 = dma.vmem_to_hbm [thread:$0]  (%p2979_p5), %s2167_s27, 256, %s2169_s22, %s2154_s28, %s2849_s0, %s2849_s0, %s2850_s17  }
 0x877 PF: > { %s3622_s24 = sld [smem:[#allocation17_spill]] }
 0x878   : > { %s3623_s26 = sld [smem:[#allocation15_spill]] }
 0x87d   : > { %p2494_p9 = scmp.ge.s32.totalorder %s3622_s24, 2 }
 0x87e   : > { %s2183_s29 = sand.u32 1, %s3623_s26  }
 0x87f   : > { %p2483_p10 = pnand %p2494_p9, %p2983_p6  ;;  %s2184_s18 = scalar_lea.sflag [#allocation4], %s2183_s29 }
 0x881   : > { %p2484_p11 = pneg %p2483_p10 }
 0x883   : > { %2815 = dma.done.wait (%p2484_p11), %s2184_s18, 256  }
 0x884   : > { %2817 = vsyncadd (%p2484_p11), %s2184_s18, 4294967040  ;;  %s3625_s27 = sld [smem:[#allocation18_spill]]  ;;  %s3628_s24 = smov %s2824_s25 }
 0x885   : > { %s3626_s23 = sld [smem:[#allocation16_spill]] }
 0x886   : > { %s3627_s26 = sld [smem:[#allocation19_spill]] }
 0x88a   : > { %p30_p12 = scmp.ge.s32.totalorder %s3625_s27, 4  }
 0x88b   : > { %s3629_s25 = smov %s3626_s23 }
 0x88c   :  { %32 = sbr.rel (!%p30_p12) target bundleno = 13 (0xd), region = 140 }
 0x891   :  { %2190 = vsyncpa [#allocation3], 1 }
 0x892   :  { %2192 = vsyncpa [#allocation3 + $0x1], 1 }
 0x893   :  { %2193 = vsyncpa [#allocation6], 1 }
 0x894   :  { %2194 = vsyncpa [#allocation9], 1 }
 0x895   :  { %2195 = vsyncpa [#allocation4], 1 }
 0x896   :  { %2197 = vsyncpa [#allocation4 + $0x1], 1 }

</bundles_post_ra>
